<compile_context>
chip_gen: v5e
topology: v5e:2x2
jax: 0.10.0
libtpu: 0.0.40
codegen_flags: <defaults>
</compile_context>

<pallas_src>
import functools
import math

import jax
import jax.numpy as jnp
from jax.experimental import pallas as pl
from jax.experimental.pallas import tpu as pltpu


def _self_attention_kernel(x_ref, mask_ref, wq_ref, bq_ref, wkv_ref, bkv_ref,
                           wp_ref, bp_ref, out_ref, attn_ref,
                           kv_vmem, o_vmem, *, num_head, bf16_exp):
    # Grid: axis 0 = batch element b, axis 1 = query-row tile qi.
    qi = pl.program_id(1)
    S, D = x_ref.shape
    TQ = out_ref.shape[0]
    H = num_head
    hd = D // H
    scale = jnp.float32(1.0 / math.sqrt(hd))

    # ---- K/V projection: computed once per batch element (qi == 0) ----------
    # Fused (S, D) x (D, 2D) bf16 MXU pass, cached in bf16 VMEM and reused by
    # every query tile of this batch element.
    @pl.when(qi == 0)
    def _():
        kv = jnp.dot(x_ref[...], wkv_ref[...],
                     preferred_element_type=jnp.float32)          # (S, 2D) f32
        kv_vmem[...] = (kv + bkv_ref[...]).astype(jnp.bfloat16)

    # ---- Q projection: per query tile (shrinks the qi==0 bubble) ------------
    row0 = pl.multiple_of(qi * TQ, TQ)
    x_tile = x_ref[pl.ds(row0, TQ), :]                            # (TQ, D) bf16
    q = jnp.dot(x_tile, wq_ref[...], preferred_element_type=jnp.float32)
    # Fold the 1/sqrt(hd) scale into q (one (TQ,D) mul instead of H x (TQ,S)).
    q_bf = ((q + bq_ref[...]) * scale).astype(jnp.bfloat16)       # (TQ, D)

    mask_tile = mask_ref[...] != 0                                # (TQ, S) bool

    # ---- Per-head attention (static lane slices, no head relayouts) ---------
    for h in range(H):                                            # H small/static
        lo = h * hd
        qh = q_bf[:, lo:lo + hd]                                  # (TQ, hd) bf16
        kh = kv_vmem[:, lo:lo + hd]                               # (S,  hd) bf16
        vh = kv_vmem[:, D + lo:D + lo + hd]                       # (S,  hd) bf16

        # logits = (q*scale) @ k^T on the MXU with f32 accumulation.
        logits = jax.lax.dot_general(
            qh, kh, (((1,), (1,)), ((), ())),
            preferred_element_type=jnp.float32)                   # (TQ, S) f32

        # masked_fill with a large finite negative: identical to -inf whenever
        # a row has >=1 unmasked entry, and no (-inf)-(-inf)=NaN hazard.
        logits = jnp.where(mask_tile, jnp.float32(-1e30), logits)

        # Softmax: max/sum/reciprocal in f32; exp in bf16 on v6e/v7x (bf16 EUP).
        m = jnp.max(logits, axis=-1, keepdims=True)
        z = logits - m
        if bf16_exp:
            e = jnp.exp(z.astype(jnp.bfloat16)).astype(jnp.float32)
        else:
            e = jnp.exp(z)
        denom = jnp.sum(e, axis=-1, keepdims=True)
        probs = e * pl.reciprocal(denom, approx=True)             # (TQ, S) f32

        probs_bf = probs.astype(jnp.bfloat16)
        attn_ref[h] = probs_bf                                    # bf16 writeback

        # o_h = probs @ v_h (bf16 MXU, f32 acc) -> lane slice of bf16 scratch.
        o_h = jnp.dot(probs_bf, vh, preferred_element_type=jnp.float32)
        o_vmem[:, lo:lo + hd] = o_h.astype(jnp.bfloat16)

    # ---- Output projection: one full-K (TQ, D) x (D, D) matmul + bias -------
    out = jnp.dot(o_vmem[...], wp_ref[...], preferred_element_type=jnp.float32)
    out_ref[...] = (out + bp_ref[...]).astype(out_ref.dtype)


def _bf16_eup_supported():
    """bf16 exp only on chips with a bf16 EUP (v6e / v7x); v5e and older: f32."""
    try:
        kind = jax.devices()[0].device_kind.lower()
    except Exception:
        return False
    return ("v6" in kind) or ("v7" in kind) or ("7x" in kind)


def self_attention_pallas(x, attn_mask, params, num_head):
    """x: (B, S, D) f32; attn_mask: (B, S, S), nonzero/True == masked.

    params = (wq, bq, wk, bk, wv, bv, wp, bp), weights pre-transposed to
    (in_dim, out_dim) so y = x @ W + b (== PyTorch x @ W_pt.T + b).
    Returns (result (B, S, D) f32, attn (B, H, S, S) bf16).
    """
    B, S, D = x.shape
    H = num_head
    assert D % H == 0
    wq, bq, wk, bk, wv, bv, wp, bp = params

    # Pre-cast MXU operands to bf16 in the wrapper (halves DMA + VMEM buffers);
    # biases stay f32.
    x_bf = x.astype(jnp.bfloat16)
    wq_bf = wq.astype(jnp.bfloat16)
    wkv_bf = jnp.concatenate([wk, wv], axis=1).astype(jnp.bfloat16)   # (D, 2D)
    bkv = jnp.concatenate([bk, bv], axis=1)                           # (1, 2D) f32
    wp_bf = wp.astype(jnp.bfloat16)

    # int8 mask: 4x less DMA / VMEM than int32.
    mask_i8 = attn_mask.astype(jnp.int8)

    # Query-row tiling: per-step working set is (H, TQ, S) rather than (H, S, S).
    # TODO(synk): at very large (S, D, H) on v7x (64 MiB VMEM), drop TQ to 64.
    TQ = S if S <= 128 else 128
    assert S % TQ == 0, "sequence length must be a multiple of the query tile"
    NQ = S // TQ

    kernel = functools.partial(_self_attention_kernel, num_head=H,
                               bf16_exp=_bf16_eup_supported())

    def vmem_need(wbuf):
        # Double-buffered streaming blocks + (wbuf-buffered) weights + scratch.
        return (2 * S * D * 2 +                  # x (bf16)
                2 * TQ * S * 1 +                 # mask (int8)
                wbuf * D * D * 2 +               # Wq (bf16)
                wbuf * D * 2 * D * 2 +           # Wkv (bf16)
                wbuf * D * D * 2 +               # Wp (bf16)
                2 * (D + 2 * D + D) * 4 +        # biases (f32)
                2 * TQ * D * 4 +                 # result block (f32)
                2 * H * TQ * S * 2 +             # attn block (bf16)
                S * 2 * D * 2 +                  # K/V scratch (bf16)
                TQ * D * 2)                      # per-tile o scratch (bf16)

    def build(single_buffer_weights):
        wbuf = 1 if single_buffer_weights else 2
        vmem_limit = min(max(int(vmem_need(wbuf) * 1.5) + (2 << 20), 32 << 20),
                         128 << 20)

        def wspec(shape):
            # Constant index_map -> a second buffer is never used; reclaim it.
            if single_buffer_weights:
                return pl.BlockSpec(shape, lambda b, q: (0, 0),
                                    pipeline_mode=pl.Buffered(1))
            return pl.BlockSpec(shape, lambda b, q: (0, 0))

        return pl.pallas_call(
            kernel,
            out_shape=(
                jax.ShapeDtypeStruct((B, S, D), jnp.float32),       # result
                jax.ShapeDtypeStruct((B, H, S, S), jnp.bfloat16),   # attn probs
            ),
            grid_spec=pltpu.PrefetchScalarGridSpec(
                num_scalar_prefetch=0,
                grid=(B, NQ),
                in_specs=[
                    pl.BlockSpec((None, S, D), lambda b, q: (b, 0, 0)),   # x (full seq)
                    pl.BlockSpec((None, TQ, S), lambda b, q: (b, q, 0)),  # mask tile
                    wspec((D, D)),          # Wq  (bf16)
                    wspec((1, D)),          # bq  (f32)
                    wspec((D, 2 * D)),      # Wkv (bf16)
                    wspec((1, 2 * D)),      # bkv (f32)
                    wspec((D, D)),          # Wp  (bf16)
                    wspec((1, D)),          # bp  (f32)
                ],
                out_specs=[
                    pl.BlockSpec((None, TQ, D), lambda b, q: (b, q, 0)),
                    pl.BlockSpec((None, H, TQ, S), lambda b, q: (b, 0, q, 0)),
                ],
                scratch_shapes=[
                    pltpu.VMEM((S, 2 * D), jnp.bfloat16),   # cached K/V per batch elem
                    pltpu.VMEM((TQ, D), jnp.bfloat16),      # per-tile head outputs
                ],
            ),
            compiler_params=pltpu.CompilerParams(
                # Batch axis parallel (sharded across v7x TensorCores); query-tile
                # axis arbitrary because it reuses the per-batch K/V scratch.
                dimension_semantics=("parallel", "arbitrary"),
                vmem_limit_bytes=vmem_limit),
        )

    args = (x_bf, mask_i8, wq_bf, bq, wkv_bf, bkv, wp_bf, bp)
    try:
        result, attn = build(single_buffer_weights=True)(*args)
    except Exception:
        # Fallback if this Pallas build rejects pipeline_mode=pl.Buffered(1).
        result, attn = build(single_buffer_weights=False)(*args)
    return result, attn


def _reference(x, attn_mask, params, num_head):
    """Pure-JAX f32 reference mirroring the PyTorch forward (dropout=0)."""
    B, S, D = x.shape
    H = num_head
    hd = D // H
    wq, bq, wk, bk, wv, bv, wp, bp = params
    q = x @ wq + bq
    k = x @ wk + bk
    v = x @ wv + bv
    q = q.reshape(B, S, H, hd).transpose(0, 2, 1, 3)
    k = k.reshape(B, S, H, hd).transpose(0, 2, 3, 1)
    v = v.reshape(B, S, H, hd).transpose(0, 2, 1, 3)
    attn = (q @ k) / math.sqrt(hd)
    mask = (attn_mask != 0)[:, None, :, :]
    attn = jnp.where(mask, -jnp.inf, attn)
    attn = jax.nn.softmax(attn, axis=-1)
    out = attn @ v
    out = out.transpose(0, 2, 1, 3).reshape(B, S, D)
    result = out @ wp + bp
    return result, attn


if __name__ == "__main__":
    B, S, D, H = 2, 8, 32, 4
    key = jax.random.PRNGKey(0)
    keys = jax.random.split(key, 10)

    x = jax.random.normal(keys[0], (B, S, D), dtype=jnp.float32)

    # Deterministic synthetic parameters (weights stored as (in, out)).
    def lin(kw, kb):
        w = jax.random.normal(kw, (D, D), dtype=jnp.float32) * 0.05
        b = jax.random.normal(kb, (1, D), dtype=jnp.float32) * 0.05
        return w, b

    wq, bq = lin(keys[1], keys[2])
    wk, bk = lin(keys[3], keys[4])
    wv, bv = lin(keys[5], keys[6])
    wp, bp = lin(keys[7], keys[8])
    params = (wq, bq, wk, bk, wv, bv, wp, bp)

    # Causal mask: mask[i, j] = True (masked) for j > i (>=1 unmasked per row).
    causal = (jnp.arange(S)[None, :] > jnp.arange(S)[:, None]).astype(jnp.int32)
    attn_mask = jnp.broadcast_to(causal, (B, S, S))

    result, attn = self_attention_pallas(x, attn_mask, params, H)
    jax.block_until_ready((result, attn))

    ref_result, ref_attn = _reference(x, attn_mask, params, H)
    assert result.shape == (B, S, D) and attn.shape == (B, H, S, S)
    # bf16 MXU inputs / bf16 attn writeback (f32 accumulation) -> relaxed
    # tolerances vs the f32 reference.
    assert jnp.allclose(result, ref_result, atol=2e-2, rtol=2e-2)
    assert jnp.allclose(attn.astype(jnp.float32), ref_attn, atol=2e-2, rtol=2e-2)

    print("KERNEL_OK")
</pallas_src>

<mosaic_0001>
module attributes {stable_mosaic.version = 11 : i64} {
  func.func @_self_attention_kernel(%arg0: i32, %arg1: i32, %arg2: memref<1x8x32xbf16, #tpu.memory_space<vmem>>, %arg3: memref<1x8x8xi8, #tpu.memory_space<vmem>>, %arg4: memref<32x32xbf16, #tpu.memory_space<vmem>>, %arg5: memref<1x32xf32, #tpu.memory_space<vmem>>, %arg6: memref<32x64xbf16, #tpu.memory_space<vmem>>, %arg7: memref<1x64xf32, #tpu.memory_space<vmem>>, %arg8: memref<32x32xbf16, #tpu.memory_space<vmem>>, %arg9: memref<1x32xf32, #tpu.memory_space<vmem>>, %arg10: memref<1x8x32xf32, #tpu.memory_space<vmem>>, %arg11: memref<1x4x8x8xbf16, #tpu.memory_space<vmem>>, %arg12: memref<8x64xbf16, #tpu.memory_space<vmem>>, %arg13: memref<8x32xbf16, #tpu.memory_space<vmem>>) attributes {dimension_semantics = [#tpu.dimension_semantics<parallel>, #tpu.dimension_semantics<arbitrary>], iteration_bounds = array<i64: 2, 1>, scalar_prefetch = 0 : i64, scratch_operands = 2 : i64, tpu.core_type = #tpu.core_type<tc>, window_params = [{transform_indices = @transform_0, window_bounds = array<i64: 1, 8, 32>}, {transform_indices = @transform_1, window_bounds = array<i64: 1, 8, 8>}, {pipeline_mode = #tpu.pipeline_mode<synchronous>, transform_indices = @transform_2, window_bounds = array<i64: 32, 32>}, {pipeline_mode = #tpu.pipeline_mode<synchronous>, transform_indices = @transform_3, window_bounds = array<i64: 1, 32>}, {pipeline_mode = #tpu.pipeline_mode<synchronous>, transform_indices = @transform_4, window_bounds = array<i64: 32, 64>}, {pipeline_mode = #tpu.pipeline_mode<synchronous>, transform_indices = @transform_5, window_bounds = array<i64: 1, 64>}, {pipeline_mode = #tpu.pipeline_mode<synchronous>, transform_indices = @transform_6, window_bounds = array<i64: 32, 32>}, {pipeline_mode = #tpu.pipeline_mode<synchronous>, transform_indices = @transform_7, window_bounds = array<i64: 1, 32>}, {transform_indices = @transform_8, window_bounds = array<i64: 1, 8, 32>}, {transform_indices = @transform_9, window_bounds = array<i64: 1, 4, 8, 8>}]} {
    %c0_i32 = arith.constant 0 : i32
    %0 = arith.cmpi eq, %arg1, %c0_i32 : i32
    %1 = arith.extui %0 : i1 to i32
    %c0_i32_0 = arith.constant 0 : i32
    %2 = arith.cmpi ne, %1, %c0_i32_0 : i32
    scf.if %2 {
      %c0_70 = arith.constant 0 : index
      %c0_71 = arith.constant 0 : index
      %c0_72 = arith.constant 0 : index
      %121 = vector.load %arg2[%c0_70, %c0_71, %c0_72] : memref<1x8x32xbf16, #tpu.memory_space<vmem>>, vector<1x8x32xbf16>
      %122 = vector.shape_cast %121 : vector<1x8x32xbf16> to vector<8x32xbf16>
      %c0_73 = arith.constant 0 : index
      %c0_74 = arith.constant 0 : index
      %123 = vector.load %arg6[%c0_73, %c0_74] : memref<32x64xbf16, #tpu.memory_space<vmem>>, vector<32x64xbf16>
      %cst_75 = arith.constant dense<0.000000e+00> : vector<8x64xf32>
      %124 = tpu.matmul %122, %123, %cst_75 {dimension_numbers = #tpu.dot_dimension_numbers<[1], [0], [0], [1], [0, 0, 1, 1], [], []>} : vector<8x32xbf16>, vector<32x64xbf16>, vector<8x64xf32> -> vector<8x64xf32>
      %c0_76 = arith.constant 0 : index
      %c0_77 = arith.constant 0 : index
      %125 = vector.load %arg7[%c0_76, %c0_77] : memref<1x64xf32, #tpu.memory_space<vmem>>, vector<1x64xf32>
      %126 = vector.broadcast %125 : vector<1x64xf32> to vector<8x64xf32>
      %127 = arith.addf %124, %126 : vector<8x64xf32>
      %128 = arith.truncf %127 : vector<8x64xf32> to vector<8x64xbf16>
      %c0_78 = arith.constant 0 : index
      %c0_79 = arith.constant 0 : index
      %129 = vector.load %arg12[%c0_78, %c0_79] : memref<8x64xbf16, #tpu.memory_space<vmem>>, vector<8x64xbf16>
      tpu.vector_store %arg12[%c0_78, %c0_79], %128 {strides = array<i32>} : memref<8x64xbf16, #tpu.memory_space<vmem>>, vector<8x64xbf16>,
    } else {
    }
    %c8_i32 = arith.constant 8 : i32
    %3 = arith.muli %arg1, %c8_i32 : i32
    %4 = tpu.assume_multiple %3, 8 : i32
    %c0 = arith.constant 0 : index
    %5 = arith.index_cast %4 : i32 to index
    %c0_1 = arith.constant 0 : index
    %6 = vector.load %arg2[%c0, %5, %c0_1] : memref<1x8x32xbf16, #tpu.memory_space<vmem>>, vector<1x8x32xbf16>
    %7 = vector.shape_cast %6 : vector<1x8x32xbf16> to vector<8x32xbf16>
    %c0_2 = arith.constant 0 : index
    %c0_3 = arith.constant 0 : index
    %8 = vector.load %arg4[%c0_2, %c0_3] : memref<32x32xbf16, #tpu.memory_space<vmem>>, vector<32x32xbf16>
    %cst = arith.constant dense<0.000000e+00> : vector<8x32xf32>
    %9 = tpu.matmul %7, %8, %cst {dimension_numbers = #tpu.dot_dimension_numbers<[1], [0], [0], [1], [0, 0, 1, 1], [], []>} : vector<8x32xbf16>, vector<32x32xbf16>, vector<8x32xf32> -> vector<8x32xf32>
    %c0_4 = arith.constant 0 : index
    %c0_5 = arith.constant 0 : index
    %10 = vector.load %arg5[%c0_4, %c0_5] : memref<1x32xf32, #tpu.memory_space<vmem>>, vector<1x32xf32>
    %11 = vector.broadcast %10 : vector<1x32xf32> to vector<8x32xf32>
    %12 = arith.addf %9, %11 : vector<8x32xf32>
    %cst_6 = arith.constant 0.353553385 : f32
    %13 = vector.broadcast %cst_6 : f32 to vector<8x32xf32>
    %14 = arith.mulf %12, %13 : vector<8x32xf32>
    %15 = arith.truncf %14 : vector<8x32xf32> to vector<8x32xbf16>
    %c0_7 = arith.constant 0 : index
    %c0_8 = arith.constant 0 : index
    %c0_9 = arith.constant 0 : index
    %16 = vector.load %arg3[%c0_7, %c0_8, %c0_9] : memref<1x8x8xi8, #tpu.memory_space<vmem>>, vector<1x8x8xi8>
    %17 = vector.shape_cast %16 : vector<1x8x8xi8> to vector<8x8xi8>
    %c0_i8 = arith.constant 0 : i8
    %18 = vector.broadcast %c0_i8 : i8 to vector<8x8xi8>
    %19 = arith.cmpi ne, %17, %18 : vector<8x8xi8>
    %20 = vector.extract_strided_slice %15 {offsets = [0, 0], sizes = [8, 8], strides = [1, 1]} : vector<8x32xbf16> to vector<8x8xbf16>
    %c0_10 = arith.constant 0 : index
    %c0_11 = arith.constant 0 : index
    %21 = vector.load %arg12[%c0_10, %c0_11] : memref<8x64xbf16, #tpu.memory_space<vmem>>, vector<8x8xbf16>
    %c0_12 = arith.constant 0 : index
    %c32 = arith.constant 32 : index
    %22 = vector.load %arg12[%c0_12, %c32] : memref<8x64xbf16, #tpu.memory_space<vmem>>, vector<8x8xbf16>
    %cst_13 = arith.constant dense<0.000000e+00> : vector<8x8xf32>
    %23 = tpu.matmul %20, %21, %cst_13 {dimension_numbers = #tpu.dot_dimension_numbers<[1], [1], [0], [0], [0, 0, 1, 0], [], []>} : vector<8x8xbf16>, vector<8x8xbf16>, vector<8x8xf32> -> vector<8x8xf32>
    %cst_14 = arith.constant -1.000000e+30 : f32
    %24 = vector.broadcast %cst_14 : f32 to vector<8x8xf32>
    %25 = arith.select %19, %24, %23 : vector<8x8xi1>, vector<8x8xf32>
    %cst_15 = arith.constant dense<0xFF800000> : vector<8xf32>
    %26 = vector.multi_reduction <maximumf>, %25, %cst_15 [1] : vector<8x8xf32> to vector<8xf32>
    %27 = vector.shape_cast %26 : vector<8xf32> to vector<8x1xf32>
    %28 = vector.broadcast %27 : vector<8x1xf32> to vector<8x8xf32>
    %29 = arith.subf %25, %28 : vector<8x8xf32>
    %30 = math.exp %29 : vector<8x8xf32>
    %cst_16 = arith.constant dense<0.000000e+00> : vector<8xf32>
    %31 = vector.multi_reduction <add>, %30, %cst_16 [1] : vector<8x8xf32> to vector<8xf32>
    %32 = vector.shape_cast %31 : vector<8xf32> to vector<8x1xf32>
    %33 = tpu.reciprocal %32 {approx = true} : vector<8x1xf32> -> vector<8x1xf32>
    %34 = vector.broadcast %33 : vector<8x1xf32> to vector<8x8xf32>
    %35 = arith.mulf %30, %34 : vector<8x8xf32>
    %36 = arith.truncf %35 : vector<8x8xf32> to vector<8x8xbf16>
    %c0_17 = arith.constant 0 : index
    %c0_18 = arith.constant 0 : index
    %c0_19 = arith.constant 0 : index
    %c0_20 = arith.constant 0 : index
    %37 = vector.load %arg11[%c0_17, %c0_18, %c0_19, %c0_20] : memref<1x4x8x8xbf16, #tpu.memory_space<vmem>>, vector<1x1x8x8xbf16>
    %38 = vector.shape_cast %37 : vector<1x1x8x8xbf16> to vector<8x8xbf16>
    %39 = vector.shape_cast %36 : vector<8x8xbf16> to vector<1x1x8x8xbf16>
    tpu.vector_store %arg11[%c0_17, %c0_18, %c0_19, %c0_20], %39 {strides = array<i32>} : memref<1x4x8x8xbf16, #tpu.memory_space<vmem>>, vector<1x1x8x8xbf16>,
    %cst_21 = arith.constant dense<0.000000e+00> : vector<8x8xf32>
    %40 = tpu.matmul %36, %22, %cst_21 {dimension_numbers = #tpu.dot_dimension_numbers<[1], [0], [0], [1], [0, 0, 1, 1], [], []>} : vector<8x8xbf16>, vector<8x8xbf16>, vector<8x8xf32> -> vector<8x8xf32>
    %41 = arith.truncf %40 : vector<8x8xf32> to vector<8x8xbf16>
    %c0_22 = arith.constant 0 : index
    %c0_23 = arith.constant 0 : index
    %42 = vector.load %arg13[%c0_22, %c0_23] : memref<8x32xbf16, #tpu.memory_space<vmem>>, vector<8x8xbf16>
    tpu.vector_store %arg13[%c0_22, %c0_23], %41 {strides = array<i32>} : memref<8x32xbf16, #tpu.memory_space<vmem>>, vector<8x8xbf16>,
    %43 = vector.extract_strided_slice %15 {offsets = [0, 8], sizes = [8, 8], strides = [1, 1]} : vector<8x32xbf16> to vector<8x8xbf16>
    %c0_24 = arith.constant 0 : index
    %c8 = arith.constant 8 : index
    %44 = vector.load %arg12[%c0_24, %c8] : memref<8x64xbf16, #tpu.memory_space<vmem>>, vector<8x8xbf16>
    %c0_25 = arith.constant 0 : index
    %c40 = arith.constant 40 : index
    %45 = vector.load %arg12[%c0_25, %c40] : memref<8x64xbf16, #tpu.memory_space<vmem>>, vector<8x8xbf16>
    %cst_26 = arith.constant dense<0.000000e+00> : vector<8x8xf32>
    %46 = tpu.matmul %43, %44, %cst_26 {dimension_numbers = #tpu.dot_dimension_numbers<[1], [1], [0], [0], [0, 0, 1, 0], [], []>} : vector<8x8xbf16>, vector<8x8xbf16>, vector<8x8xf32> -> vector<8x8xf32>
    %cst_27 = arith.constant -1.000000e+30 : f32
    %47 = vector.broadcast %cst_27 : f32 to vector<8x8xf32>
    %48 = arith.select %19, %47, %46 : vector<8x8xi1>, vector<8x8xf32>
    %cst_28 = arith.constant dense<0xFF800000> : vector<8xf32>
    %49 = vector.multi_reduction <maximumf>, %48, %cst_28 [1] : vector<8x8xf32> to vector<8xf32>
    %50 = vector.shape_cast %49 : vector<8xf32> to vector<8x1xf32>
    %51 = vector.broadcast %50 : vector<8x1xf32> to vector<8x8xf32>
    %52 = arith.subf %48, %51 : vector<8x8xf32>
    %53 = math.exp %52 : vector<8x8xf32>
    %cst_29 = arith.constant dense<0.000000e+00> : vector<8xf32>
    %54 = vector.multi_reduction <add>, %53, %cst_29 [1] : vector<8x8xf32> to vector<8xf32>
    %55 = vector.shape_cast %54 : vector<8xf32> to vector<8x1xf32>
    %56 = tpu.reciprocal %55 {approx = true} : vector<8x1xf32> -> vector<8x1xf32>
    %57 = vector.broadcast %56 : vector<8x1xf32> to vector<8x8xf32>
    %58 = arith.mulf %53, %57 : vector<8x8xf32>
    %59 = arith.truncf %58 : vector<8x8xf32> to vector<8x8xbf16>
    %c0_30 = arith.constant 0 : index
    %c1 = arith.constant 1 : index
    %c0_31 = arith.constant 0 : index
    %c0_32 = arith.constant 0 : index
    %60 = vector.load %arg11[%c0_30, %c1, %c0_31, %c0_32] : memref<1x4x8x8xbf16, #tpu.memory_space<vmem>>, vector<1x1x8x8xbf16>
    %61 = vector.shape_cast %60 : vector<1x1x8x8xbf16> to vector<8x8xbf16>
    %62 = vector.shape_cast %59 : vector<8x8xbf16> to vector<1x1x8x8xbf16>
    tpu.vector_store %arg11[%c0_30, %c1, %c0_31, %c0_32], %62 {strides = array<i32>} : memref<1x4x8x8xbf16, #tpu.memory_space<vmem>>, vector<1x1x8x8xbf16>,
    %cst_33 = arith.constant dense<0.000000e+00> : vector<8x8xf32>
    %63 = tpu.matmul %59, %45, %cst_33 {dimension_numbers = #tpu.dot_dimension_numbers<[1], [0], [0], [1], [0, 0, 1, 1], [], []>} : vector<8x8xbf16>, vector<8x8xbf16>, vector<8x8xf32> -> vector<8x8xf32>
    %64 = arith.truncf %63 : vector<8x8xf32> to vector<8x8xbf16>
    %c0_34 = arith.constant 0 : index
    %c8_35 = arith.constant 8 : index
    %65 = vector.load %arg13[%c0_34, %c8_35] : memref<8x32xbf16, #tpu.memory_space<vmem>>, vector<8x8xbf16>
    tpu.vector_store %arg13[%c0_34, %c8_35], %64 {strides = array<i32>} : memref<8x32xbf16, #tpu.memory_space<vmem>>, vector<8x8xbf16>,
    %66 = vector.extract_strided_slice %15 {offsets = [0, 16], sizes = [8, 8], strides = [1, 1]} : vector<8x32xbf16> to vector<8x8xbf16>
    %c0_36 = arith.constant 0 : index
    %c16 = arith.constant 16 : index
    %67 = vector.load %arg12[%c0_36, %c16] : memref<8x64xbf16, #tpu.memory_space<vmem>>, vector<8x8xbf16>
    %c0_37 = arith.constant 0 : index
    %c48 = arith.constant 48 : index
    %68 = vector.load %arg12[%c0_37, %c48] : memref<8x64xbf16, #tpu.memory_space<vmem>>, vector<8x8xbf16>
    %cst_38 = arith.constant dense<0.000000e+00> : vector<8x8xf32>
    %69 = tpu.matmul %66, %67, %cst_38 {dimension_numbers = #tpu.dot_dimension_numbers<[1], [1], [0], [0], [0, 0, 1, 0], [], []>} : vector<8x8xbf16>, vector<8x8xbf16>, vector<8x8xf32> -> vector<8x8xf32>
    %cst_39 = arith.constant -1.000000e+30 : f32
    %70 = vector.broadcast %cst_39 : f32 to vector<8x8xf32>
    %71 = arith.select %19, %70, %69 : vector<8x8xi1>, vector<8x8xf32>
    %cst_40 = arith.constant dense<0xFF800000> : vector<8xf32>
    %72 = vector.multi_reduction <maximumf>, %71, %cst_40 [1] : vector<8x8xf32> to vector<8xf32>
    %73 = vector.shape_cast %72 : vector<8xf32> to vector<8x1xf32>
    %74 = vector.broadcast %73 : vector<8x1xf32> to vector<8x8xf32>
    %75 = arith.subf %71, %74 : vector<8x8xf32>
    %76 = math.exp %75 : vector<8x8xf32>
    %cst_41 = arith.constant dense<0.000000e+00> : vector<8xf32>
    %77 = vector.multi_reduction <add>, %76, %cst_41 [1] : vector<8x8xf32> to vector<8xf32>
    %78 = vector.shape_cast %77 : vector<8xf32> to vector<8x1xf32>
    %79 = tpu.reciprocal %78 {approx = true} : vector<8x1xf32> -> vector<8x1xf32>
    %80 = vector.broadcast %79 : vector<8x1xf32> to vector<8x8xf32>
    %81 = arith.mulf %76, %80 : vector<8x8xf32>
    %82 = arith.truncf %81 : vector<8x8xf32> to vector<8x8xbf16>
    %c0_42 = arith.constant 0 : index
    %c2 = arith.constant 2 : index
    %c0_43 = arith.constant 0 : index
    %c0_44 = arith.constant 0 : index
    %83 = vector.load %arg11[%c0_42, %c2, %c0_43, %c0_44] : memref<1x4x8x8xbf16, #tpu.memory_space<vmem>>, vector<1x1x8x8xbf16>
    %84 = vector.shape_cast %83 : vector<1x1x8x8xbf16> to vector<8x8xbf16>
    %85 = vector.shape_cast %82 : vector<8x8xbf16> to vector<1x1x8x8xbf16>
    tpu.vector_store %arg11[%c0_42, %c2, %c0_43, %c0_44], %85 {strides = array<i32>} : memref<1x4x8x8xbf16, #tpu.memory_space<vmem>>, vector<1x1x8x8xbf16>,
    %cst_45 = arith.constant dense<0.000000e+00> : vector<8x8xf32>
    %86 = tpu.matmul %82, %68, %cst_45 {dimension_numbers = #tpu.dot_dimension_numbers<[1], [0], [0], [1], [0, 0, 1, 1], [], []>} : vector<8x8xbf16>, vector<8x8xbf16>, vector<8x8xf32> -> vector<8x8xf32>
    %87 = arith.truncf %86 : vector<8x8xf32> to vector<8x8xbf16>
    %c0_46 = arith.constant 0 : index
    %c16_47 = arith.constant 16 : index
    %88 = vector.load %arg13[%c0_46, %c16_47] : memref<8x32xbf16, #tpu.memory_space<vmem>>, vector<8x8xbf16>
    tpu.vector_store %arg13[%c0_46, %c16_47], %87 {strides = array<i32>} : memref<8x32xbf16, #tpu.memory_space<vmem>>, vector<8x8xbf16>,
    %89 = vector.extract_strided_slice %15 {offsets = [0, 24], sizes = [8, 8], strides = [1, 1]} : vector<8x32xbf16> to vector<8x8xbf16>
    %c0_48 = arith.constant 0 : index
    %c24 = arith.constant 24 : index
    %90 = vector.load %arg12[%c0_48, %c24] : memref<8x64xbf16, #tpu.memory_space<vmem>>, vector<8x8xbf16>
    %c0_49 = arith.constant 0 : index
    %c56 = arith.constant 56 : index
    %91 = vector.load %arg12[%c0_49, %c56] : memref<8x64xbf16, #tpu.memory_space<vmem>>, vector<8x8xbf16>
    %cst_50 = arith.constant dense<0.000000e+00> : vector<8x8xf32>
    %92 = tpu.matmul %89, %90, %cst_50 {dimension_numbers = #tpu.dot_dimension_numbers<[1], [1], [0], [0], [0, 0, 1, 0], [], []>} : vector<8x8xbf16>, vector<8x8xbf16>, vector<8x8xf32> -> vector<8x8xf32>
    %cst_51 = arith.constant -1.000000e+30 : f32
    %93 = vector.broadcast %cst_51 : f32 to vector<8x8xf32>
    %94 = arith.select %19, %93, %92 : vector<8x8xi1>, vector<8x8xf32>
    %cst_52 = arith.constant dense<0xFF800000> : vector<8xf32>
    %95 = vector.multi_reduction <maximumf>, %94, %cst_52 [1] : vector<8x8xf32> to vector<8xf32>
    %96 = vector.shape_cast %95 : vector<8xf32> to vector<8x1xf32>
    %97 = vector.broadcast %96 : vector<8x1xf32> to vector<8x8xf32>
    %98 = arith.subf %94, %97 : vector<8x8xf32>
    %99 = math.exp %98 : vector<8x8xf32>
    %cst_53 = arith.constant dense<0.000000e+00> : vector<8xf32>
    %100 = vector.multi_reduction <add>, %99, %cst_53 [1] : vector<8x8xf32> to vector<8xf32>
    %101 = vector.shape_cast %100 : vector<8xf32> to vector<8x1xf32>
    %102 = tpu.reciprocal %101 {approx = true} : vector<8x1xf32> -> vector<8x1xf32>
    %103 = vector.broadcast %102 : vector<8x1xf32> to vector<8x8xf32>
    %104 = arith.mulf %99, %103 : vector<8x8xf32>
    %105 = arith.truncf %104 : vector<8x8xf32> to vector<8x8xbf16>
    %c0_54 = arith.constant 0 : index
    %c3 = arith.constant 3 : index
    %c0_55 = arith.constant 0 : index
    %c0_56 = arith.constant 0 : index
    %106 = vector.load %arg11[%c0_54, %c3, %c0_55, %c0_56] : memref<1x4x8x8xbf16, #tpu.memory_space<vmem>>, vector<1x1x8x8xbf16>
    %107 = vector.shape_cast %106 : vector<1x1x8x8xbf16> to vector<8x8xbf16>
    %108 = vector.shape_cast %105 : vector<8x8xbf16> to vector<1x1x8x8xbf16>
    tpu.vector_store %arg11[%c0_54, %c3, %c0_55, %c0_56], %108 {strides = array<i32>} : memref<1x4x8x8xbf16, #tpu.memory_space<vmem>>, vector<1x1x8x8xbf16>,
    %cst_57 = arith.constant dense<0.000000e+00> : vector<8x8xf32>
    %109 = tpu.matmul %105, %91, %cst_57 {dimension_numbers = #tpu.dot_dimension_numbers<[1], [0], [0], [1], [0, 0, 1, 1], [], []>} : vector<8x8xbf16>, vector<8x8xbf16>, vector<8x8xf32> -> vector<8x8xf32>
    %110 = arith.truncf %109 : vector<8x8xf32> to vector<8x8xbf16>
    %c0_58 = arith.constant 0 : index
    %c24_59 = arith.constant 24 : index
    %111 = vector.load %arg13[%c0_58, %c24_59] : memref<8x32xbf16, #tpu.memory_space<vmem>>, vector<8x8xbf16>
    tpu.vector_store %arg13[%c0_58, %c24_59], %110 {strides = array<i32>} : memref<8x32xbf16, #tpu.memory_space<vmem>>, vector<8x8xbf16>,
    %c0_60 = arith.constant 0 : index
    %c0_61 = arith.constant 0 : index
    %112 = vector.load %arg13[%c0_60, %c0_61] : memref<8x32xbf16, #tpu.memory_space<vmem>>, vector<8x32xbf16>
    %c0_62 = arith.constant 0 : index
    %c0_63 = arith.constant 0 : index
    %113 = vector.load %arg8[%c0_62, %c0_63] : memref<32x32xbf16, #tpu.memory_space<vmem>>, vector<32x32xbf16>
    %cst_64 = arith.constant dense<0.000000e+00> : vector<8x32xf32>
    %114 = tpu.matmul %112, %113, %cst_64 {dimension_numbers = #tpu.dot_dimension_numbers<[1], [0], [0], [1], [0, 0, 1, 1], [], []>} : vector<8x32xbf16>, vector<32x32xbf16>, vector<8x32xf32> -> vector<8x32xf32>
    %c0_65 = arith.constant 0 : index
    %c0_66 = arith.constant 0 : index
    %115 = vector.load %arg9[%c0_65, %c0_66] : memref<1x32xf32, #tpu.memory_space<vmem>>, vector<1x32xf32>
    %116 = vector.broadcast %115 : vector<1x32xf32> to vector<8x32xf32>
    %117 = arith.addf %114, %116 : vector<8x32xf32>
    %c0_67 = arith.constant 0 : index
    %c0_68 = arith.constant 0 : index
    %c0_69 = arith.constant 0 : index
    %118 = vector.load %arg10[%c0_67, %c0_68, %c0_69] : memref<1x8x32xf32, #tpu.memory_space<vmem>>, vector<1x8x32xf32>
    %119 = vector.shape_cast %118 : vector<1x8x32xf32> to vector<8x32xf32>
    %120 = vector.shape_cast %117 : vector<8x32xf32> to vector<1x8x32xf32>
    tpu.vector_store %arg10[%c0_67, %c0_68, %c0_69], %120 {strides = array<i32>} : memref<1x8x32xf32, #tpu.memory_space<vmem>>, vector<1x8x32xf32>,
    return
  }
  func.func @transform_0(%arg0: i32, %arg1: i32) -> (i32, i32, i32) {
    %c0_i32 = arith.constant 0 : i32
    %c0_i32_0 = arith.constant 0 : i32
    %c0_i32_1 = arith.constant 0 : i32
    return %arg0, %c0_i32, %c0_i32_0 : i32, i32, i32
  }
  func.func @transform_1(%arg0: i32, %arg1: i32) -> (i32, i32, i32) {
    %c0_i32 = arith.constant 0 : i32
    %c0_i32_0 = arith.constant 0 : i32
    return %arg0, %arg1, %c0_i32 : i32, i32, i32
  }
  func.func @transform_2(%arg0: i32, %arg1: i32) -> (i32, i32) {
    %c0_i32 = arith.constant 0 : i32
    %c0_i32_0 = arith.constant 0 : i32
    %c0_i32_1 = arith.constant 0 : i32
    return %c0_i32, %c0_i32_0 : i32, i32
  }
  func.func @transform_3(%arg0: i32, %arg1: i32) -> (i32, i32) {
    %c0_i32 = arith.constant 0 : i32
    %c0_i32_0 = arith.constant 0 : i32
    %c0_i32_1 = arith.constant 0 : i32
    return %c0_i32, %c0_i32_0 : i32, i32
  }
  func.func @transform_4(%arg0: i32, %arg1: i32) -> (i32, i32) {
    %c0_i32 = arith.constant 0 : i32
    %c0_i32_0 = arith.constant 0 : i32
    %c0_i32_1 = arith.constant 0 : i32
    return %c0_i32, %c0_i32_0 : i32, i32
  }
  func.func @transform_5(%arg0: i32, %arg1: i32) -> (i32, i32) {
    %c0_i32 = arith.constant 0 : i32
    %c0_i32_0 = arith.constant 0 : i32
    %c0_i32_1 = arith.constant 0 : i32
    return %c0_i32, %c0_i32_0 : i32, i32
  }
  func.func @transform_6(%arg0: i32, %arg1: i32) -> (i32, i32) {
    %c0_i32 = arith.constant 0 : i32
    %c0_i32_0 = arith.constant 0 : i32
    %c0_i32_1 = arith.constant 0 : i32
    return %c0_i32, %c0_i32_0 : i32, i32
  }
  func.func @transform_7(%arg0: i32, %arg1: i32) -> (i32, i32) {
    %c0_i32 = arith.constant 0 : i32
    %c0_i32_0 = arith.constant 0 : i32
    %c0_i32_1 = arith.constant 0 : i32
    return %c0_i32, %c0_i32_0 : i32, i32
  }
  func.func @transform_8(%arg0: i32, %arg1: i32) -> (i32, i32, i32) {
    %c0_i32 = arith.constant 0 : i32
    %c0_i32_0 = arith.constant 0 : i32
    return %arg0, %arg1, %c0_i32 : i32, i32, i32
  }
  func.func @transform_9(%arg0: i32, %arg1: i32) -> (i32, i32, i32, i32) {
    %c0_i32 = arith.constant 0 : i32
    %c0_i32_0 = arith.constant 0 : i32
    %c0_i32_1 = arith.constant 0 : i32
    return %arg0, %c0_i32, %arg1, %c0_i32_0 : i32, i32, i32, i32
  }
}

module attributes {stable_mosaic.version = 11 : i64} {
  func.func @_self_attention_kernel(%arg0: i32, %arg1: i32, %arg2: memref<1x8x32xbf16, #tpu.memory_space<vmem>>, %arg3: memref<1x8x8xi8, #tpu.memory_space<vmem>>, %arg4: memref<32x32xbf16, #tpu.memory_space<vmem>>, %arg5: memref<1x32xf32, #tpu.memory_space<vmem>>, %arg6: memref<32x64xbf16, #tpu.memory_space<vmem>>, %arg7: memref<1x64xf32, #tpu.memory_space<vmem>>, %arg8: memref<32x32xbf16, #tpu.memory_space<vmem>>, %arg9: memref<1x32xf32, #tpu.memory_space<vmem>>, %arg10: memref<1x8x32xf32, #tpu.memory_space<vmem>>, %arg11: memref<1x4x8x8xbf16, #tpu.memory_space<vmem>>, %arg12: memref<8x64xbf16, #tpu.memory_space<vmem>>, %arg13: memref<8x32xbf16, #tpu.memory_space<vmem>>) attributes {dimension_semantics = [#tpu.dimension_semantics<parallel>, #tpu.dimension_semantics<arbitrary>], iteration_bounds = array<i64: 2, 1>, scalar_prefetch = 0 : i64, scratch_operands = 2 : i64, tpu.core_type = #tpu.core_type<tc>, window_params = [{transform_indices = @transform_0, window_bounds = array<i64: 1, 8, 32>}, {transform_indices = @transform_1, window_bounds = array<i64: 1, 8, 8>}, {pipeline_mode = #tpu.pipeline_mode<synchronous>, transform_indices = @transform_2, window_bounds = array<i64: 32, 32>}, {pipeline_mode = #tpu.pipeline_mode<synchronous>, transform_indices = @transform_3, window_bounds = array<i64: 1, 32>}, {pipeline_mode = #tpu.pipeline_mode<synchronous>, transform_indices = @transform_4, window_bounds = array<i64: 32, 64>}, {pipeline_mode = #tpu.pipeline_mode<synchronous>, transform_indices = @transform_5, window_bounds = array<i64: 1, 64>}, {pipeline_mode = #tpu.pipeline_mode<synchronous>, transform_indices = @transform_6, window_bounds = array<i64: 32, 32>}, {pipeline_mode = #tpu.pipeline_mode<synchronous>, transform_indices = @transform_7, window_bounds = array<i64: 1, 32>}, {transform_indices = @transform_8, window_bounds = array<i64: 1, 8, 32>}, {transform_indices = @transform_9, window_bounds = array<i64: 1, 4, 8, 8>}]} {
    %c0_i32 = arith.constant 0 : i32
    %0 = arith.cmpi eq, %arg1, %c0_i32 : i32
    %1 = arith.extui %0 : i1 to i32
    %c0_i32_0 = arith.constant 0 : i32
    %2 = arith.cmpi ne, %1, %c0_i32_0 : i32
    scf.if %2 {
      %c0_70 = arith.constant 0 : index
      %c0_71 = arith.constant 0 : index
      %c0_72 = arith.constant 0 : index
      %121 = vector.load %arg2[%c0_70, %c0_71, %c0_72] : memref<1x8x32xbf16, #tpu.memory_space<vmem>>, vector<1x8x32xbf16>
      %122 = vector.shape_cast %121 : vector<1x8x32xbf16> to vector<8x32xbf16>
      %c0_73 = arith.constant 0 : index
      %c0_74 = arith.constant 0 : index
      %123 = vector.load %arg6[%c0_73, %c0_74] : memref<32x64xbf16, #tpu.memory_space<vmem>>, vector<32x64xbf16>
      %cst_75 = arith.constant dense<0.000000e+00> : vector<8x64xf32>
      %124 = tpu.matmul %122, %123, %cst_75 {dimension_numbers = #tpu.dot_dimension_numbers<[1], [0], [0], [1], [0, 0, 1, 1], [], []>} : vector<8x32xbf16>, vector<32x64xbf16>, vector<8x64xf32> -> vector<8x64xf32>
      %c0_76 = arith.constant 0 : index
      %c0_77 = arith.constant 0 : index
      %125 = vector.load %arg7[%c0_76, %c0_77] : memref<1x64xf32, #tpu.memory_space<vmem>>, vector<1x64xf32>
      %126 = vector.broadcast %125 : vector<1x64xf32> to vector<8x64xf32>
      %127 = arith.addf %124, %126 : vector<8x64xf32>
      %128 = arith.truncf %127 : vector<8x64xf32> to vector<8x64xbf16>
      %c0_78 = arith.constant 0 : index
      %c0_79 = arith.constant 0 : index
      %129 = vector.load %arg12[%c0_78, %c0_79] : memref<8x64xbf16, #tpu.memory_space<vmem>>, vector<8x64xbf16>
      tpu.vector_store %arg12[%c0_78, %c0_79], %128 {strides = array<i32>} : memref<8x64xbf16, #tpu.memory_space<vmem>>, vector<8x64xbf16>,
    } else {
    }
    %c8_i32 = arith.constant 8 : i32
    %3 = arith.muli %arg1, %c8_i32 : i32
    %4 = tpu.assume_multiple %3, 8 : i32
    %c0 = arith.constant 0 : index
    %5 = arith.index_cast %4 : i32 to index
    %c0_1 = arith.constant 0 : index
    %6 = vector.load %arg2[%c0, %5, %c0_1] : memref<1x8x32xbf16, #tpu.memory_space<vmem>>, vector<1x8x32xbf16>
    %7 = vector.shape_cast %6 : vector<1x8x32xbf16> to vector<8x32xbf16>
    %c0_2 = arith.constant 0 : index
    %c0_3 = arith.constant 0 : index
    %8 = vector.load %arg4[%c0_2, %c0_3] : memref<32x32xbf16, #tpu.memory_space<vmem>>, vector<32x32xbf16>
    %cst = arith.constant dense<0.000000e+00> : vector<8x32xf32>
    %9 = tpu.matmul %7, %8, %cst {dimension_numbers = #tpu.dot_dimension_numbers<[1], [0], [0], [1], [0, 0, 1, 1], [], []>} : vector<8x32xbf16>, vector<32x32xbf16>, vector<8x32xf32> -> vector<8x32xf32>
    %c0_4 = arith.constant 0 : index
    %c0_5 = arith.constant 0 : index
    %10 = vector.load %arg5[%c0_4, %c0_5] : memref<1x32xf32, #tpu.memory_space<vmem>>, vector<1x32xf32>
    %11 = vector.broadcast %10 : vector<1x32xf32> to vector<8x32xf32>
    %12 = arith.addf %9, %11 : vector<8x32xf32>
    %cst_6 = arith.constant 0.353553385 : f32
    %13 = vector.broadcast %cst_6 : f32 to vector<8x32xf32>
    %14 = arith.mulf %12, %13 : vector<8x32xf32>
    %15 = arith.truncf %14 : vector<8x32xf32> to vector<8x32xbf16>
    %c0_7 = arith.constant 0 : index
    %c0_8 = arith.constant 0 : index
    %c0_9 = arith.constant 0 : index
    %16 = vector.load %arg3[%c0_7, %c0_8, %c0_9] : memref<1x8x8xi8, #tpu.memory_space<vmem>>, vector<1x8x8xi8>
    %17 = vector.shape_cast %16 : vector<1x8x8xi8> to vector<8x8xi8>
    %c0_i8 = arith.constant 0 : i8
    %18 = vector.broadcast %c0_i8 : i8 to vector<8x8xi8>
    %19 = arith.cmpi ne, %17, %18 : vector<8x8xi8>
    %20 = vector.extract_strided_slice %15 {offsets = [0, 0], sizes = [8, 8], strides = [1, 1]} : vector<8x32xbf16> to vector<8x8xbf16>
    %c0_10 = arith.constant 0 : index
    %c0_11 = arith.constant 0 : index
    %21 = vector.load %arg12[%c0_10, %c0_11] : memref<8x64xbf16, #tpu.memory_space<vmem>>, vector<8x8xbf16>
    %c0_12 = arith.constant 0 : index
    %c32 = arith.constant 32 : index
    %22 = vector.load %arg12[%c0_12, %c32] : memref<8x64xbf16, #tpu.memory_space<vmem>>, vector<8x8xbf16>
    %cst_13 = arith.constant dense<0.000000e+00> : vector<8x8xf32>
    %23 = tpu.matmul %20, %21, %cst_13 {dimension_numbers = #tpu.dot_dimension_numbers<[1], [1], [0], [0], [0, 0, 1, 0], [], []>} : vector<8x8xbf16>, vector<8x8xbf16>, vector<8x8xf32> -> vector<8x8xf32>
    %cst_14 = arith.constant -1.000000e+30 : f32
    %24 = vector.broadcast %cst_14 : f32 to vector<8x8xf32>
    %25 = arith.select %19, %24, %23 : vector<8x8xi1>, vector<8x8xf32>
    %cst_15 = arith.constant dense<0xFF800000> : vector<8xf32>
    %26 = vector.multi_reduction <maximumf>, %25, %cst_15 [1] : vector<8x8xf32> to vector<8xf32>
    %27 = vector.shape_cast %26 : vector<8xf32> to vector<8x1xf32>
    %28 = vector.broadcast %27 : vector<8x1xf32> to vector<8x8xf32>
    %29 = arith.subf %25, %28 : vector<8x8xf32>
    %30 = math.exp %29 : vector<8x8xf32>
    %cst_16 = arith.constant dense<0.000000e+00> : vector<8xf32>
    %31 = vector.multi_reduction <add>, %30, %cst_16 [1] : vector<8x8xf32> to vector<8xf32>
    %32 = vector.shape_cast %31 : vector<8xf32> to vector<8x1xf32>
    %33 = tpu.reciprocal %32 {approx = true} : vector<8x1xf32> -> vector<8x1xf32>
    %34 = vector.broadcast %33 : vector<8x1xf32> to vector<8x8xf32>
    %35 = arith.mulf %30, %34 : vector<8x8xf32>
    %36 = arith.truncf %35 : vector<8x8xf32> to vector<8x8xbf16>
    %c0_17 = arith.constant 0 : index
    %c0_18 = arith.constant 0 : index
    %c0_19 = arith.constant 0 : index
    %c0_20 = arith.constant 0 : index
    %37 = vector.load %arg11[%c0_17, %c0_18, %c0_19, %c0_20] : memref<1x4x8x8xbf16, #tpu.memory_space<vmem>>, vector<1x1x8x8xbf16>
    %38 = vector.shape_cast %37 : vector<1x1x8x8xbf16> to vector<8x8xbf16>
    %39 = vector.shape_cast %36 : vector<8x8xbf16> to vector<1x1x8x8xbf16>
    tpu.vector_store %arg11[%c0_17, %c0_18, %c0_19, %c0_20], %39 {strides = array<i32>} : memref<1x4x8x8xbf16, #tpu.memory_space<vmem>>, vector<1x1x8x8xbf16>,
    %cst_21 = arith.constant dense<0.000000e+00> : vector<8x8xf32>
    %40 = tpu.matmul %36, %22, %cst_21 {dimension_numbers = #tpu.dot_dimension_numbers<[1], [0], [0], [1], [0, 0, 1, 1], [], []>} : vector<8x8xbf16>, vector<8x8xbf16>, vector<8x8xf32> -> vector<8x8xf32>
    %41 = arith.truncf %40 : vector<8x8xf32> to vector<8x8xbf16>
    %c0_22 = arith.constant 0 : index
    %c0_23 = arith.constant 0 : index
    %42 = vector.load %arg13[%c0_22, %c0_23] : memref<8x32xbf16, #tpu.memory_space<vmem>>, vector<8x8xbf16>
    tpu.vector_store %arg13[%c0_22, %c0_23], %41 {strides = array<i32>} : memref<8x32xbf16, #tpu.memory_space<vmem>>, vector<8x8xbf16>,
    %43 = vector.extract_strided_slice %15 {offsets = [0, 8], sizes = [8, 8], strides = [1, 1]} : vector<8x32xbf16> to vector<8x8xbf16>
    %c0_24 = arith.constant 0 : index
    %c8 = arith.constant 8 : index
    %44 = vector.load %arg12[%c0_24, %c8] : memref<8x64xbf16, #tpu.memory_space<vmem>>, vector<8x8xbf16>
    %c0_25 = arith.constant 0 : index
    %c40 = arith.constant 40 : index
    %45 = vector.load %arg12[%c0_25, %c40] : memref<8x64xbf16, #tpu.memory_space<vmem>>, vector<8x8xbf16>
    %cst_26 = arith.constant dense<0.000000e+00> : vector<8x8xf32>
    %46 = tpu.matmul %43, %44, %cst_26 {dimension_numbers = #tpu.dot_dimension_numbers<[1], [1], [0], [0], [0, 0, 1, 0], [], []>} : vector<8x8xbf16>, vector<8x8xbf16>, vector<8x8xf32> -> vector<8x8xf32>
    %cst_27 = arith.constant -1.000000e+30 : f32
    %47 = vector.broadcast %cst_27 : f32 to vector<8x8xf32>
    %48 = arith.select %19, %47, %46 : vector<8x8xi1>, vector<8x8xf32>
    %cst_28 = arith.constant dense<0xFF800000> : vector<8xf32>
    %49 = vector.multi_reduction <maximumf>, %48, %cst_28 [1] : vector<8x8xf32> to vector<8xf32>
    %50 = vector.shape_cast %49 : vector<8xf32> to vector<8x1xf32>
    %51 = vector.broadcast %50 : vector<8x1xf32> to vector<8x8xf32>
    %52 = arith.subf %48, %51 : vector<8x8xf32>
    %53 = math.exp %52 : vector<8x8xf32>
    %cst_29 = arith.constant dense<0.000000e+00> : vector<8xf32>
    %54 = vector.multi_reduction <add>, %53, %cst_29 [1] : vector<8x8xf32> to vector<8xf32>
    %55 = vector.shape_cast %54 : vector<8xf32> to vector<8x1xf32>
    %56 = tpu.reciprocal %55 {approx = true} : vector<8x1xf32> -> vector<8x1xf32>
    %57 = vector.broadcast %56 : vector<8x1xf32> to vector<8x8xf32>
    %58 = arith.mulf %53, %57 : vector<8x8xf32>
    %59 = arith.truncf %58 : vector<8x8xf32> to vector<8x8xbf16>
    %c0_30 = arith.constant 0 : index
    %c1 = arith.constant 1 : index
    %c0_31 = arith.constant 0 : index
    %c0_32 = arith.constant 0 : index
    %60 = vector.load %arg11[%c0_30, %c1, %c0_31, %c0_32] : memref<1x4x8x8xbf16, #tpu.memory_space<vmem>>, vector<1x1x8x8xbf16>
    %61 = vector.shape_cast %60 : vector<1x1x8x8xbf16> to vector<8x8xbf16>
    %62 = vector.shape_cast %59 : vector<8x8xbf16> to vector<1x1x8x8xbf16>
    tpu.vector_store %arg11[%c0_30, %c1, %c0_31, %c0_32], %62 {strides = array<i32>} : memref<1x4x8x8xbf16, #tpu.memory_space<vmem>>, vector<1x1x8x8xbf16>,
    %cst_33 = arith.constant dense<0.000000e+00> : vector<8x8xf32>
    %63 = tpu.matmul %59, %45, %cst_33 {dimension_numbers = #tpu.dot_dimension_numbers<[1], [0], [0], [1], [0, 0, 1, 1], [], []>} : vector<8x8xbf16>, vector<8x8xbf16>, vector<8x8xf32> -> vector<8x8xf32>
    %64 = arith.truncf %63 : vector<8x8xf32> to vector<8x8xbf16>
    %c0_34 = arith.constant 0 : index
    %c8_35 = arith.constant 8 : index
    %65 = vector.load %arg13[%c0_34, %c8_35] : memref<8x32xbf16, #tpu.memory_space<vmem>>, vector<8x8xbf16>
    tpu.vector_store %arg13[%c0_34, %c8_35], %64 {strides = array<i32>} : memref<8x32xbf16, #tpu.memory_space<vmem>>, vector<8x8xbf16>,
    %66 = vector.extract_strided_slice %15 {offsets = [0, 16], sizes = [8, 8], strides = [1, 1]} : vector<8x32xbf16> to vector<8x8xbf16>
    %c0_36 = arith.constant 0 : index
    %c16 = arith.constant 16 : index
    %67 = vector.load %arg12[%c0_36, %c16] : memref<8x64xbf16, #tpu.memory_space<vmem>>, vector<8x8xbf16>
    %c0_37 = arith.constant 0 : index
    %c48 = arith.constant 48 : index
    %68 = vector.load %arg12[%c0_37, %c48] : memref<8x64xbf16, #tpu.memory_space<vmem>>, vector<8x8xbf16>
    %cst_38 = arith.constant dense<0.000000e+00> : vector<8x8xf32>
    %69 = tpu.matmul %66, %67, %cst_38 {dimension_numbers = #tpu.dot_dimension_numbers<[1], [1], [0], [0], [0, 0, 1, 0], [], []>} : vector<8x8xbf16>, vector<8x8xbf16>, vector<8x8xf32> -> vector<8x8xf32>
    %cst_39 = arith.constant -1.000000e+30 : f32
    %70 = vector.broadcast %cst_39 : f32 to vector<8x8xf32>
    %71 = arith.select %19, %70, %69 : vector<8x8xi1>, vector<8x8xf32>
    %cst_40 = arith.constant dense<0xFF800000> : vector<8xf32>
    %72 = vector.multi_reduction <maximumf>, %71, %cst_40 [1] : vector<8x8xf32> to vector<8xf32>
    %73 = vector.shape_cast %72 : vector<8xf32> to vector<8x1xf32>
    %74 = vector.broadcast %73 : vector<8x1xf32> to vector<8x8xf32>
    %75 = arith.subf %71, %74 : vector<8x8xf32>
    %76 = math.exp %75 : vector<8x8xf32>
    %cst_41 = arith.constant dense<0.000000e+00> : vector<8xf32>
    %77 = vector.multi_reduction <add>, %76, %cst_41 [1] : vector<8x8xf32> to vector<8xf32>
    %78 = vector.shape_cast %77 : vector<8xf32> to vector<8x1xf32>
    %79 = tpu.reciprocal %78 {approx = true} : vector<8x1xf32> -> vector<8x1xf32>
    %80 = vector.broadcast %79 : vector<8x1xf32> to vector<8x8xf32>
    %81 = arith.mulf %76, %80 : vector<8x8xf32>
    %82 = arith.truncf %81 : vector<8x8xf32> to vector<8x8xbf16>
    %c0_42 = arith.constant 0 : index
    %c2 = arith.constant 2 : index
    %c0_43 = arith.constant 0 : index
    %c0_44 = arith.constant 0 : index
    %83 = vector.load %arg11[%c0_42, %c2, %c0_43, %c0_44] : memref<1x4x8x8xbf16, #tpu.memory_space<vmem>>, vector<1x1x8x8xbf16>
    %84 = vector.shape_cast %83 : vector<1x1x8x8xbf16> to vector<8x8xbf16>
    %85 = vector.shape_cast %82 : vector<8x8xbf16> to vector<1x1x8x8xbf16>
    tpu.vector_store %arg11[%c0_42, %c2, %c0_43, %c0_44], %85 {strides = array<i32>} : memref<1x4x8x8xbf16, #tpu.memory_space<vmem>>, vector<1x1x8x8xbf16>,
    %cst_45 = arith.constant dense<0.000000e+00> : vector<8x8xf32>
    %86 = tpu.matmul %82, %68, %cst_45 {dimension_numbers = #tpu.dot_dimension_numbers<[1], [0], [0], [1], [0, 0, 1, 1], [], []>} : vector<8x8xbf16>, vector<8x8xbf16>, vector<8x8xf32> -> vector<8x8xf32>
    %87 = arith.truncf %86 : vector<8x8xf32> to vector<8x8xbf16>
    %c0_46 = arith.constant 0 : index
    %c16_47 = arith.constant 16 : index
    %88 = vector.load %arg13[%c0_46, %c16_47] : memref<8x32xbf16, #tpu.memory_space<vmem>>, vector<8x8xbf16>
    tpu.vector_store %arg13[%c0_46, %c16_47], %87 {strides = array<i32>} : memref<8x32xbf16, #tpu.memory_space<vmem>>, vector<8x8xbf16>,
    %89 = vector.extract_strided_slice %15 {offsets = [0, 24], sizes = [8, 8], strides = [1, 1]} : vector<8x32xbf16> to vector<8x8xbf16>
    %c0_48 = arith.constant 0 : index
    %c24 = arith.constant 24 : index
    %90 = vector.load %arg12[%c0_48, %c24] : memref<8x64xbf16, #tpu.memory_space<vmem>>, vector<8x8xbf16>
    %c0_49 = arith.constant 0 : index
    %c56 = arith.constant 56 : index
    %91 = vector.load %arg12[%c0_49, %c56] : memref<8x64xbf16, #tpu.memory_space<vmem>>, vector<8x8xbf16>
    %cst_50 = arith.constant dense<0.000000e+00> : vector<8x8xf32>
    %92 = tpu.matmul %89, %90, %cst_50 {dimension_numbers = #tpu.dot_dimension_numbers<[1], [1], [0], [0], [0, 0, 1, 0], [], []>} : vector<8x8xbf16>, vector<8x8xbf16>, vector<8x8xf32> -> vector<8x8xf32>
    %cst_51 = arith.constant -1.000000e+30 : f32
    %93 = vector.broadcast %cst_51 : f32 to vector<8x8xf32>
    %94 = arith.select %19, %93, %92 : vector<8x8xi1>, vector<8x8xf32>
    %cst_52 = arith.constant dense<0xFF800000> : vector<8xf32>
    %95 = vector.multi_reduction <maximumf>, %94, %cst_52 [1] : vector<8x8xf32> to vector<8xf32>
    %96 = vector.shape_cast %95 : vector<8xf32> to vector<8x1xf32>
    %97 = vector.broadcast %96 : vector<8x1xf32> to vector<8x8xf32>
    %98 = arith.subf %94, %97 : vector<8x8xf32>
    %99 = math.exp %98 : vector<8x8xf32>
    %cst_53 = arith.constant dense<0.000000e+00> : vector<8xf32>
    %100 = vector.multi_reduction <add>, %99, %cst_53 [1] : vector<8x8xf32> to vector<8xf32>
    %101 = vector.shape_cast %100 : vector<8xf32> to vector<8x1xf32>
    %102 = tpu.reciprocal %101 {approx = true} : vector<8x1xf32> -> vector<8x1xf32>
    %103 = vector.broadcast %102 : vector<8x1xf32> to vector<8x8xf32>
    %104 = arith.mulf %99, %103 : vector<8x8xf32>
    %105 = arith.truncf %104 : vector<8x8xf32> to vector<8x8xbf16>
    %c0_54 = arith.constant 0 : index
    %c3 = arith.constant 3 : index
    %c0_55 = arith.constant 0 : index
    %c0_56 = arith.constant 0 : index
    %106 = vector.load %arg11[%c0_54, %c3, %c0_55, %c0_56] : memref<1x4x8x8xbf16, #tpu.memory_space<vmem>>, vector<1x1x8x8xbf16>
    %107 = vector.shape_cast %106 : vector<1x1x8x8xbf16> to vector<8x8xbf16>
    %108 = vector.shape_cast %105 : vector<8x8xbf16> to vector<1x1x8x8xbf16>
    tpu.vector_store %arg11[%c0_54, %c3, %c0_55, %c0_56], %108 {strides = array<i32>} : memref<1x4x8x8xbf16, #tpu.memory_space<vmem>>, vector<1x1x8x8xbf16>,
    %cst_57 = arith.constant dense<0.000000e+00> : vector<8x8xf32>
    %109 = tpu.matmul %105, %91, %cst_57 {dimension_numbers = #tpu.dot_dimension_numbers<[1], [0], [0], [1], [0, 0, 1, 1], [], []>} : vector<8x8xbf16>, vector<8x8xbf16>, vector<8x8xf32> -> vector<8x8xf32>
    %110 = arith.truncf %109 : vector<8x8xf32> to vector<8x8xbf16>
    %c0_58 = arith.constant 0 : index
    %c24_59 = arith.constant 24 : index
    %111 = vector.load %arg13[%c0_58, %c24_59] : memref<8x32xbf16, #tpu.memory_space<vmem>>, vector<8x8xbf16>
    tpu.vector_store %arg13[%c0_58, %c24_59], %110 {strides = array<i32>} : memref<8x32xbf16, #tpu.memory_space<vmem>>, vector<8x8xbf16>,
    %c0_60 = arith.constant 0 : index
    %c0_61 = arith.constant 0 : index
    %112 = vector.load %arg13[%c0_60, %c0_61] : memref<8x32xbf16, #tpu.memory_space<vmem>>, vector<8x32xbf16>
    %c0_62 = arith.constant 0 : index
    %c0_63 = arith.constant 0 : index
    %113 = vector.load %arg8[%c0_62, %c0_63] : memref<32x32xbf16, #tpu.memory_space<vmem>>, vector<32x32xbf16>
    %cst_64 = arith.constant dense<0.000000e+00> : vector<8x32xf32>
    %114 = tpu.matmul %112, %113, %cst_64 {dimension_numbers = #tpu.dot_dimension_numbers<[1], [0], [0], [1], [0, 0, 1, 1], [], []>} : vector<8x32xbf16>, vector<32x32xbf16>, vector<8x32xf32> -> vector<8x32xf32>
    %c0_65 = arith.constant 0 : index
    %c0_66 = arith.constant 0 : index
    %115 = vector.load %arg9[%c0_65, %c0_66] : memref<1x32xf32, #tpu.memory_space<vmem>>, vector<1x32xf32>
    %116 = vector.broadcast %115 : vector<1x32xf32> to vector<8x32xf32>
    %117 = arith.addf %114, %116 : vector<8x32xf32>
    %c0_67 = arith.constant 0 : index
    %c0_68 = arith.constant 0 : index
    %c0_69 = arith.constant 0 : index
    %118 = vector.load %arg10[%c0_67, %c0_68, %c0_69] : memref<1x8x32xf32, #tpu.memory_space<vmem>>, vector<1x8x32xf32>
    %119 = vector.shape_cast %118 : vector<1x8x32xf32> to vector<8x32xf32>
    %120 = vector.shape_cast %117 : vector<8x32xf32> to vector<1x8x32xf32>
    tpu.vector_store %arg10[%c0_67, %c0_68, %c0_69], %120 {strides = array<i32>} : memref<1x8x32xf32, #tpu.memory_space<vmem>>, vector<1x8x32xf32>,
    return
  }
  func.func @transform_0(%arg0: i32, %arg1: i32) -> (i32, i32, i32) {
    %c0_i32 = arith.constant 0 : i32
    %c0_i32_0 = arith.constant 0 : i32
    %c0_i32_1 = arith.constant 0 : i32
    return %arg0, %c0_i32, %c0_i32_0 : i32, i32, i32
  }
  func.func @transform_1(%arg0: i32, %arg1: i32) -> (i32, i32, i32) {
    %c0_i32 = arith.constant 0 : i32
    %c0_i32_0 = arith.constant 0 : i32
    return %arg0, %arg1, %c0_i32 : i32, i32, i32
  }
  func.func @transform_2(%arg0: i32, %arg1: i32) -> (i32, i32) {
    %c0_i32 = arith.constant 0 : i32
    %c0_i32_0 = arith.constant 0 : i32
    %c0_i32_1 = arith.constant 0 : i32
    return %c0_i32, %c0_i32_0 : i32, i32
  }
  func.func @transform_3(%arg0: i32, %arg1: i32) -> (i32, i32) {
    %c0_i32 = arith.constant 0 : i32
    %c0_i32_0 = arith.constant 0 : i32
    %c0_i32_1 = arith.constant 0 : i32
    return %c0_i32, %c0_i32_0 : i32, i32
  }
  func.func @transform_4(%arg0: i32, %arg1: i32) -> (i32, i32) {
    %c0_i32 = arith.constant 0 : i32
    %c0_i32_0 = arith.constant 0 : i32
    %c0_i32_1 = arith.constant 0 : i32
    return %c0_i32, %c0_i32_0 : i32, i32
  }
  func.func @transform_5(%arg0: i32, %arg1: i32) -> (i32, i32) {
    %c0_i32 = arith.constant 0 : i32
    %c0_i32_0 = arith.constant 0 : i32
    %c0_i32_1 = arith.constant 0 : i32
    return %c0_i32, %c0_i32_0 : i32, i32
  }
  func.func @transform_6(%arg0: i32, %arg1: i32) -> (i32, i32) {
    %c0_i32 = arith.constant 0 : i32
    %c0_i32_0 = arith.constant 0 : i32
    %c0_i32_1 = arith.constant 0 : i32
    return %c0_i32, %c0_i32_0 : i32, i32
  }
  func.func @transform_7(%arg0: i32, %arg1: i32) -> (i32, i32) {
    %c0_i32 = arith.constant 0 : i32
    %c0_i32_0 = arith.constant 0 : i32
    %c0_i32_1 = arith.constant 0 : i32
    return %c0_i32, %c0_i32_0 : i32, i32
  }
  func.func @transform_8(%arg0: i32, %arg1: i32) -> (i32, i32, i32) {
    %c0_i32 = arith.constant 0 : i32
    %c0_i32_0 = arith.constant 0 : i32
    return %arg0, %arg1, %c0_i32 : i32, i32, i32
  }
  func.func @transform_9(%arg0: i32, %arg1: i32) -> (i32, i32, i32, i32) {
    %c0_i32 = arith.constant 0 : i32
    %c0_i32_0 = arith.constant 0 : i32
    %c0_i32_1 = arith.constant 0 : i32
    return %arg0, %c0_i32, %arg1, %c0_i32_0 : i32, i32, i32, i32
  }
}

</mosaic_0001>

<bundles_post_ra>
// kernel: tpu_custom_call.1
= control target key start
LH: loop header
LB: loop body
LE: loop exit
PB: predicated region body
PF: predicated region fallthrough
CT: control target
= control target key end

     0   :  { %s1911_s0 = inlined_call_operand.hbm [shape: bf16[2,8,32], index: 0, kind: input, shape index: {}]   ;;  %s1912_s1 = inlined_call_operand.hbm [shape: s8[2,8,8], index: 1, kind: input, shape index: {}]   ;;  %s1913_s2 = inlined_call_operand.hbm [shape: bf16[32,32], index: 2, kind: input, shape index: {}]   ;;  %s1914_s3 = inlined_call_operand.vmem [shape: f32[1,32], index: 3, kind: input, shape index: {}]   ;;  %s1915_s4 = inlined_call_operand.hbm [shape: bf16[32,64], index: 4, kind: input, shape index: {}]   ;;  %s1916_s5 = inlined_call_operand.vmem [shape: f32[1,64], index: 5, kind: input, shape index: {}]   ;;  %s1917_s6 = inlined_call_operand.hbm [shape: bf16[32,32], index: 6, kind: input, shape index: {}]   ;;  %s1918_s7 = inlined_call_operand.vmem [shape: f32[1,32], index: 7, kind: input, shape index: {}]   ;;  %s1919_s8 = inlined_call_operand.hbm [shape: f32[2,8,32], index: 8, kind: output, shape index: {0}]   ;;  %s1920_s9 = inlined_call_operand.hbm [shape: bf16[2,4,8,8], index: 9, kind: output, shape index: {1}]  }
   0x1   :  { %1927 = sst [smem:[#allocation27_spill]] %s1913_s2 }
   0x2   :  { %1928 = sst [smem:[#allocation28_spill]] %s1915_s4 }
   0x3   :  { %1929 = sst [smem:[#allocation29_spill]] %s1917_s6 }
   0x4   :  { %1930 = sst [smem:[#allocation30_spill]] %s1918_s7 }
   0x5   :  { %1931 = sst [smem:[#allocation31_spill]] %s1919_s8 }
   0x6   :  { %1932 = sst [smem:[#allocation32_spill]] %s1920_s9 }
   0x7   :  { %15 = vsyncpa [#allocation5], 0 }
   0x8   :  { %17 = vsyncpa [#allocation5 + $0x1], 0 }
   0x9   :  { %18 = vsyncpa [#allocation8], 0 }
   0xa   :  { %20 = vsyncpa [#allocation8 + $0x1], 0 }
   0xb   :  { %21 = vsyncpa [#allocation11], 0 }
   0xc   :  { %22 = vsyncpa [#allocation6], 0 }
   0xd   :  { %24 = vsyncpa [#allocation6 + $0x1], 0 }
   0xe   :  { %25 = vsyncpa [#allocation15], 0 }
   0xf   :  { %27 = vsyncpa [#allocation15 + $0x1], 0  ;;  %s1642_s30 = smov 0   ;;  %s1644_s10 = smov 0  }
  0x10   :  { %s1646_s11 = smov 0   ;;  %s1648_s12 = smov 0  }
  0x11   :  { %s1650_s13 = smov 0   ;;  %s1652_s14 = smov 0  }
  0x12 LB: > { %1933 = sst [smem:[#allocation22_spill]] %s1552_s30  ;;  %s1673_s15 = sadd.s32 4294967295, %s1572_s14   ;;  %s1572_s14 = sphi %s1652_s14, %s33_s14   ;;  %s1568_s13 = sphi %s1650_s13, %s1961_s13   ;;  %s1564_s12 = sphi %s1648_s12, %s1960_s12   ;;  %s1560_s11 = sphi %s1646_s11, %s1956_s11   ;;  %s1556_s10 = sphi %s1644_s10, %s1959_s10   ;;  %s1552_s30 = sphi %s1642_s30, %s1958_s30  }
  0x13   : > { %1934 = sst [smem:[#allocation23_spill]] %s1560_s11  ;;  %p1090_p0 = scmp.ge.s32.totalorder %s1572_s14, 1 }
  0x14   : > { %p66_p1 = scmp.eq.s32.totalorder %s1673_s15, 0  ;;  %p286_p2 = scmp.lt.s32.totalorder %s1572_s14, 3 }
  0x15   : > { %s1935_s2 = sld [smem:[#allocation27_spill]]  ;;  %s1574_s20 = smov [#allocation9]  }
  0x16   : > { %p1681_p3 = pnand %p1090_p0, %p286_p2  ;;  %s299_s21 = sshll.u32 %s1574_s20, 4  ;;  %s300_s21 = int_to_ptr.vmem [resolvable:$true] %s299_s21 }
  0x17   : > { %p1094_p6 = scmp.ge.s32.totalorder %s1572_s14, 2  ;;  %s1938_s4 = sld [smem:[#allocation28_spill]] }
  0x18   : > { %p1179_p4 = pneg %p1681_p3  ;;  %s1575_s26 = smov 64  }
  0x19   : > { %s1576_s27 = smov 4   ;;  %s1577_s28 = smov [#allocation10]  }
  0x1a   : > { %p1689_p5 = pnand %p1179_p4, %p66_p1  ;;  %s316_s29 = sshll.u32 %s1577_s28, 4  ;;  %s317_s29 = int_to_ptr.vmem [resolvable:$true] %s316_s29 }
  0x1b   : > { %s297_s18 = sshll.u32 %s1935_s2, 4  ;;  %s1939_s6 = sld [smem:[#allocation29_spill]]  ;;  %s298_s18 = int_to_ptr.hbm [resolvable:$true] %s297_s18 }
  0x1c   : > { %1182 = dma.hbm_to_vmem [thread:$0]  (!%p1689_p5), %s298_s18, 256, %s300_s21, [#allocation8], %s1575_s26, %s1575_s26, %s1576_s27  }
  0x1d   : > { %s314_s25 = sshll.u32 %s1938_s4, 4  ;;  %s1578_s23 = smov [#allocation12]   ;;  %s315_s25 = int_to_ptr.hbm [resolvable:$true] %s314_s25 }
  0x1e   : > { %1185 = dma.hbm_to_vmem [thread:$0]  (!%p1689_p5), %s315_s25, 256, %s317_s29, [#allocation11], %s1575_s26, %s1575_s26, %s1576_s27  }
  0x1f   : > { %s333_s24 = sshll.u32 %s1578_s23, 4  ;;  %s1089_s18 = sadd.s32 4294967294, %s1572_s14   ;;  %s334_s24 = int_to_ptr.vmem [resolvable:$true] %s333_s24 }
  0x20   : > { %s45_s21 = sadd.s32 1, %s1568_s13  ;;  %s52_s28 = sadd.s32 1, %s1560_s11 }
  0x21   : > { %s331_s20 = sshll.u32 %s1939_s6, 4  ;;  %p47_p7 = scmp.ge.s32.totalorder %s45_s21, 2  ;;  %s332_s20 = int_to_ptr.hbm [resolvable:$true] %s331_s20 }
  0x22   : > { %1188 = dma.hbm_to_vmem [thread:$0]  (!%p1689_p5), %s332_s20, 256, %s334_s24, [#allocation11], %s1575_s26, %s1575_s26, %s1576_s27  }
  0x23   : > { %p59_p8 = scmp.ne.s32.totalorder %s1560_s11, %s1556_s10  ;;  %p60_p9 = scmp.eq.s32.totalorder %s1572_s14, 0 }
  0x24   : > { %p65_p10 = scmp.ne.s32.totalorder %s1556_s10, %s1552_s30  ;;  %s1963_s21 = smov (%p47_p7, %s45_s21), 0 }
  0x25   : > { %1940 = sst [smem:[#allocation24_spill]] %s1963_s21  ;;  %p1716_p11 = por %p60_p9, %p59_p8 }
  0x26   : > { %p1722_p12 = por %p66_p1, %p65_p10  ;;  %s49_s26 = ssub.s32 %s1568_s13, %s1963_s21 }
  0x27   : > { %p245_p13 = scmp.eq.s32.totalorder %s1673_s15, 1  ;;  %p50_p0 = scmp.eq.s32.totalorder %s49_s26, 0 }
  0x28   : > { %p251_p2 = scmp.eq.s32.totalorder %s1089_s18, 1  ;;  %p1206_p5 = scmp.lt.s32.totalorder %s1572_s14, 2 }
  0x29   : > { %p1729_p4 = por %p245_p13, %p59_p8  ;;  %s350_s17 = sand.u32 1, %s1560_s11  }
  0x2a   : > { %s1735_s29 = scalar_select %p50_p0, %s1560_s11, %s52_s28  }
  0x2b   : > { %p1737_p7 = por %p251_p2, %p65_p10  ;;  %s1095_s20 = sshll.u32 %s350_s17, 2 }
  0x2c   : > { %1944 = sst [smem:[#allocation25_spill]] %s1735_s29  ;;  %s1096_s23 = sshll.u32 %s1568_s13, 2 }
  0x2d   : > { %s1945_s16 = scalar_select %p1737_p7, 1, 0 }
  0x2e   : > { %s358_s26 = scalar_lea.hbm %s1911_s0, %s1096_s23  ;;  %s354_s18 = scalar_lea.vmem [#allocation4], %s1095_s20 }
  0x2f   : > { %1946 = sst [smem:[#allocation26_spill]] %s1945_s16  ;;  %s362_s4 = sshll.u32 %s354_s18, 4  ;;  %s363_s4 = int_to_ptr.vmem [resolvable:$true] %s362_s4 }
  0x30   : > { %s360_s6 = sshll.u32 %s358_s26, 4  ;;  %p1190_p8 = pnand %p1206_p5, %p1716_p11  ;;  %s361_s6 = int_to_ptr.hbm [resolvable:$true] %s360_s6 }
  0x31   : > { %s369_s28 = sand.u32 1, %s1572_s14   ;;  %s1097_s21 = sshll.u32 %s350_s17, 1 }
  0x32   : > { %s351_s29 = scalar_lea.sflag [#allocation5], %s350_s17  ;;  %s1098_s30 = sshll.u32 %s1568_s13, 1 }
  0x33   : > { %1192 = dma.hbm_to_vmem [thread:$0]  (!%p1190_p8), %s361_s6, 64, %s363_s4, %s351_s29  }
  0x34   : > { %s378_s7 = scalar_lea.hbm %s1912_s1, %s1098_s30  ;;  %s373_s8 = scalar_lea.vmem [#allocation7], %s1097_s21 }
  0x35   : > { %s382_s9 = sshll.u32 %s373_s8, 4  ;;  %s380_s2 = sshll.u32 %s378_s7, 4  ;;  %s383_s9 = int_to_ptr.vmem [resolvable:$true] %s382_s9  ;;  %s381_s2 = int_to_ptr.hbm [resolvable:$true] %s380_s2 }
  0x36   : > { %s370_s20 = scalar_lea.sflag [#allocation8], %s369_s28  ;;  %391 = sbr.rel (%p1681_p3) target bundleno = 1409 (0x581), region = 52 }
  0x37   : > { %1195 = dma.hbm_to_vmem [thread:$0]  (!%p1190_p8), %s381_s2, 32, %s383_s9, %s370_s20  }
  0x38   : > { %s1756_s25 = sand.u32 (!%p1681_p3), 1, %s1556_s10  }
  0x39   : > { %s1100_s4 = sshll.u32 (!%p1681_p3), %s1756_s25, 2  ;;  %s394_s6 = scalar_lea.sflag (!%p1681_p3), [#allocation5], %s1756_s25 }
  0x3a   : > { %s397_s11 = scalar_lea.vmem (!%p1681_p3), [#allocation4], %s1100_s4 }
  0x3b   : > { %1527 = dma.done.wait (%p1722_p12), %s394_s6, 64  }
  0x3c   : > { %1529 = vsyncadd (%p1722_p12), %s394_s6, 4294967232  ;;  %s403_s7 = sand.u32 1, %s1673_s15   ;;  %s1101_s8 = sshll.u32 %s1756_s25, 1 }
  0x3d   : > { %s404_s9 = scalar_lea.sflag [#allocation8], %s403_s7  ;;  %s1766_s30 = scalar_lea.vmem [#allocation7], %s1101_s8 }
  0x3e   : > { %1531 = dma.done.wait (%p1722_p12), %s404_s9, 32  }
  0x3f   : > { %1533 = vsyncadd (%p1722_p12), %s404_s9, 4294967264 }
  0x40   : > { %1535 = dma.done.wait (%p66_p1), [#allocation8], 256  }
  0x41   : > { %1537 = vsyncadd (%p66_p1), [#allocation8], 4294967040 }
  0x42   : > { %1539 = dma.done.wait (%p66_p1), [#allocation11], 512  }
  0x43   : > { %1541 = vsyncadd (%p66_p1), [#allocation11], 4294966784  ;;  %v1153_v0 = vld [vmem:[#allocation10 + $0x8] sm:$0xff]  ;;  %v1155_v1 = vld [vmem:[#allocation9 + $0x8] sm:$0xff]  ;;  %vm496_vm0 = vcmask 261120   ;;  %vm514_vm1 = vcmask 519168  }
  0x44   : > { %v1152_v2 = vld [vmem:[#allocation10] sm:$0xff]  ;;  %506 = vmatpush.bf16.msra.mxu0 %v1153_v0  ;;  %552 = vmatpush.bf16.msra.mxu1 %v1155_v1  ;;  %v1154_v3 = vld [vmem:[#allocation9] sm:$0xff]  ;;  %v1277_v6 = vld [vmem:[%s1916_s5] ss:$0 sm:$0xff]  ;;  %vm564_vm2 = vcmask 64512   ;;  %s1579_s29 = smov 120  }
  0x45   : > { %v475_v4 = vld [vmem:[%s397_s11] sm:$0xf]  ;;  %v1278_v7 = vld [vmem:[%s1914_s3] ss:$0 sm:$0xff]  ;;  %s1580_s16 = smov 96   ;;  %s1581_s17 = smov 112  }
  0x46   : > { %v521_v5 = vld [vmem:[%s397_s11] sm:$0xf]  ;;  %s1582_s23 = smov 104   ;;  %vm610_vm3 = vcmask 1043456   ;;  %v561_v34 = vld [vmem:[%s1766_s30] sm:$0x3] }
  0x47   : > { %vm562_vm4 = vnez %v561_v34  ;;  %v1583_v37 = vmov 0   ;;  %s1106_s24 = sshll.u32 %s1756_s25, 4  ;;  %vm600_vm6 = vcmask 60416   ;;  %s1584_s18 = smov 88   ;;  %vm700_vm7 = vcmask 126016  }
  0x48   : > { %507 = vmatpush.bf16.msra.mxu0 %v1152_v2  ;;  %553 = vmatpush.bf16.msra.mxu1 %v1154_v3  ;;  %v584_v38 = vsel %vm562_vm4, 16843009, %v1583_v37  ;;  %s1820_s26 = scalar_lea.vmem [#allocation14], %s1106_s24  ;;  %s1585_s28 = smov 80   ;;  %vm770_vm8 = vcmask 191616   ;;  %vm840_vm9 = vcmask 257216  }
  0x49   : > { %v585_v39 = vunpack.c.0.s8 %v584_v38  ;;  %s1586_s2 = smov 72   ;;  %s1587_s20 = smov 8  }
  0x4a   : > { %s1588_s4 = smov 16   ;;  %s1589_s6 = smov 24  }
  0x4b   : > { %1115 = vmatmul.msk.bf16.vlgmr.msra.gmra.mxu0 %vm496_vm0, %v475_v4  ;;  %1124 = vmatmul.msk.bf16.vlgmr.msra.gmra.mxu1 %vm496_vm0, %v521_v5  ;;  %vm1802_vm5 = vcmp.ne.s32.totalorder %v585_v39, 0  ;;  %s1158_s11 = sshll.u32 %s1564_s12, 4  ;;  %s1949_s9 = sld [smem:[#allocation32_spill]] }
  0x4c   : > { %s914_s19 = sshll.u32 %s1820_s26, 4  ;;  %s886_s15 = scalar_lea.sflag [#allocation15], %s1756_s25  ;;  %s915_s19 = int_to_ptr.vmem [resolvable:$true] %s914_s19 }
  0x51   : > { %s913_s30 = scalar_lea.hbm %s1949_s9, %s1158_s11 }
  0x52   : > { %s916_s21 = sshll.u32 %s913_s30, 4  ;;  %s917_s21 = int_to_ptr.hbm [resolvable:$true] %s916_s21 }
  0x53   : > { %s1460_s22 = sshra.s32 %s917_s21, 4  ;;  %s1461_s22 = int_to_ptr.hbm [resolvable:$true] %s1460_s22 }
  0x54   : > { %p1467_p10 = scmp.lt.s32.totalorder %s1461_s22, %s1949_s9 }
  0xc8   : > { %v509_v8 = vpop.f32.mrf.mxu0  ;;  %v555_v9 = vpop.f32.mrf.mxu1 }
  0xc9   : > { %v510_v10 = vadd.f32 %v1277_v6, %v509_v8  ;;  %v556_v11 = vadd.f32 %v1278_v7, %v555_v9 }
  0xcb   : > { %v513_v12 = vpack.c.bf16 %v510_v10, %v510_v10  ;;  %v559_v13 = vmul.f32 0.35355338, %v556_v11 }
  0xcd   : > { %515 = vst.msk [vmem:[#allocation2] sm:$0xf] %vm514_vm1, %v513_v12  ;;  %v560_v14 = vpack.c.bf16 %v559_v13, %v559_v13 }
  0xcf   : > { %v631_v15 = vunpack.c.l.b16 %v560_v14 }
  0xd0   : > { %v511_v16 = vpop.f32.mrf.mxu0  ;;  %v557_v17 = vpop.f32.mrf.mxu1 }
  0xd1   : > { %v632_v18 = vpack.c.b16 %v631_v15, %v631_v15 }
  0xd3   : > { %633 = vrot.lane.b32.xlu2 %v632_v18, %s1579_s29 }
  0xd4   : > { %v563_v19 = vld [vmem:[#allocation2] sm:$0xf] }
  0xd5   : > { %v702_v20 = vld [vmem:[#allocation2] sm:$0xf]  ;;  %v569_v21 = vsel %vm564_vm2, %v563_v19, 0  ;;  %v603_v22 = vunpack.c.l.b16 %v563_v19 }
  0xd6   : > { %v706_v23 = vunpack.c.l.b16 %v702_v20  ;;  %578 = vmatpush.bf16.xpose.msra.mxu2 %v569_v21  ;;  %v629_v25 = vld [vmem:[#allocation2] sm:$0xf] }
  0xd7   : > { %v604_v24 = vpack.c.b16 %v603_v22, %v603_v22  ;;  %v636_v27 = vunpack.c.l.b16 %v629_v25  ;;  %v772_v55 = vld [vmem:[#allocation2] sm:$0xf] }
  0xd8   : > { %v1789_v26 = vpack.c.b16 %v706_v23, %v706_v23  ;;  %v776_v56 = vunpack.c.l.b16 %v772_v55  ;;  %v1156_v55 = vld [vmem:[#allocation12] sm:$0xff] }
  0xd9   : > { %605 = vrot.lane.b32.xlu1 %v604_v24, %s1580_s16  ;;  %v1793_v28 = vpack.c.b16 %v636_v27, %v636_v27 }
  0xda   : > { %v1813_v57 = vpack.c.b16 %v776_v56, %v776_v56 }
  0xdb   : > { %708 = vrot.lane.b32.xlu2 %v1789_v26, %s1581_s17 }
  0xdd   : > { %1125 = vmatmul.msk.bf16.vlgmr.msra.gmra.mxu2 %vm564_vm2, %v560_v14 }
  0xe1   : > { %638 = vrot.lane.b32.xlu1 %v1793_v28, %s1579_s29  ;;  %s1462_s29 = scalar_lea.hbm %s1461_s22, 16 }
  0xe2   : > { %p1463_p1 = scmp.ne.s32.totalorder %s1461_s22, %s1462_s29 }
  0xe3   : > { %773 = vrot.lane.b32.xlu2 %v632_v18, %s1582_s23 }
  0xe4   : > { %p1464_p3 = pnand %p1463_p1, %p1729_p4 }
  0xe6   : > { %p1465_p9 = pneg %p1464_p3 }
  0xe9   : > { %703 = vrot.lane.b32.xlu1 %v632_v18, %s1581_s17 }
 0x12d   : > { %v634_v29 = vpop.permute.xlu2 %633 }
 0x135   : > { %v709_v30 = vpop.permute.xlu2 %708 }
 0x136   : > { %v714_v31 = vsel %vm564_vm2, %v709_v30, 0 }
 0x137   : > { %723 = vmatpush.bf16.xpose.msrb.mxu1 %v714_v31 }
 0x13d   : > { %v774_v58 = vpop.permute.xlu2 %773 }
 0x14b   : > { %v606_v32 = vpop.permute.xlu1 %605 }
 0x14c   : > { %v612_v33 = vsel %vm610_vm3, %v606_v32, 0 }
 0x14d   : > { %621 = vmatpush.bf16.msra.mxu3 %v612_v33 }
 0x153   : > { %v639_v35 = vpop.permute.xlu1 %638 }
 0x154   : > { %v644_v36 = vsel %vm564_vm2, %v639_v35, 0 }
 0x155   : > { %653 = vmatpush.bf16.xpose.msrb.mxu3 %v644_v36 }
 0x15b   : > { %v704_v40 = vpop.permute.xlu1 %703 }
 0x15c   : > { %1130 = vmatmul.msk.bf16.vlgmr.msrb.gmra.mxu1 %vm564_vm2, %v704_v40 }
 0x160   : > { %v580_v42 = vpop.f32.mrf.mxu2 }
 0x161   : > { %v587_v43 = vsel %vm1802_vm5, -1e+30, %v580_v42 }
 0x162   : > { %v588_v44 = vsel %vm564_vm2, %v587_v43, -inf }
 0x163   : > { %589 = vmax.xlane.f32.xlu0 %v588_v44 }
 0x168   : > { %v582_v45 = vpop.f32.mrf.mxu2 }
 0x1d6   : > { %v590_v46 = vpop.xlane.xlu0 %589 }
 0x1d7   : > { %v591_v47 = vsub.f32 %v587_v43, %v590_v46 }
 0x1d9   : > { %v592_v48 = vmul.f32 1.442695, %v591_v47  ;;  %v725_v49 = vpop.f32.mrf.mxu1 }
 0x1da   : > { %v729_v50 = vsel %vm1802_vm5, -1e+30, %v725_v49 }
 0x1db   : > { %1280 = vpow2.f32 %v592_v48  ;;  %v730_v51 = vsel %vm564_vm2, %v729_v50, -inf }
 0x1dc   : > { %731 = vmax.xlane.f32.xlu2 %v730_v51 }
 0x1e1   : > { %v1281_v52 = vpop.eup %1280  ;;  %v727_v53 = vpop.f32.mrf.mxu1 }
 0x1e2   : > { %v594_v54 = vsel %vm564_vm2, %v1281_v52, 0.0 }
 0x1e3   : > { %595 = vadd.xlane.f32.xlu0 %v594_v54  ;;  %v1157_v54 = vld [vmem:[#allocation12 + $0x8] sm:$0xff] }
 0x1e4   : > { %872 = vmatpush.bf16.msra.mxu1 %v1157_v54 }
 0x1e8   : > { %873 = vmatpush.bf16.msra.mxu1 %v1156_v55 }
 0x1f7   : > { %778 = vrot.lane.b32.xlu0 %v1813_v57, %s1582_s23  ;;  %s1466_s23 = scalar_lea.hbm %s1949_s9, 32 }
 0x1f8   : > { %p1468_p11 = scmp.lt.s32.totalorder %s1466_s23, %s1462_s29 }
 0x1fa   : > { %p1469_p12 = por %p1468_p11, %p1467_p10 }
 0x1fc   : > { %p1470_p13 = pnand %p1469_p12, %p1465_p9 }
 0x24f   : > { %v732_v59 = vpop.xlane.xlu2 %731 }
 0x250   : > { %v733_v60 = vsub.f32 %v729_v50, %v732_v59 }
 0x252   : > { %v734_v61 = vmul.f32 1.442695, %v733_v60 }
 0x254   : > { %1282 = vpow2.f32 %v734_v61 }
 0x256   : > { %v596_v62 = vpop.xlane.xlu0 %595 }
 0x257   : > { %1284 = vrcp.f32 %v596_v62 }
 0x25a   : > { %v1283_v63 = vpop.eup %1282 }
 0x25b   : > { %v736_v0 = vsel %vm564_vm2, %v1283_v63, 0.0 }
 0x25c   : > { %737 = vadd.xlane.f32.xlu2 %v736_v0 }
 0x25d   : > { %v1285_v1 = vpop.eup %1284 }
 0x25e   : > { %v598_v2 = vmul.f32 %v1285_v1, %v1281_v52 }
 0x260   : > { %v599_v3 = vpack.c.bf16 %v598_v2, %v598_v2 }
 0x262   : > { %1126 = vmatmul.msk.bf16.vlgmr.msra.gmra.mxu3 %vm564_vm2, %v599_v3  ;;  %601 = vst.msk [vmem:[%s1820_s26] sm:$0xf] %vm600_vm6, %v599_v3 }
 0x269   : > { %v779_v4 = vpop.permute.xlu0 %778 }
 0x26a   : > { %v784_v5 = vsel %vm564_vm2, %v779_v4, 0 }
 0x26b   : > { %793 = vmatpush.bf16.xpose.msra.mxu3 %v784_v5 }
 0x272   : > { %1127 = vmatmul.msk.bf16.vlgmr.msrb.gmra.mxu3 %vm564_vm2, %v634_v29 }
 0x282   : > { %1133 = vmatmul.msk.bf16.vlgmr.msra.gmra.mxu3 %vm564_vm2, %v774_v58 }
 0x2cf   : > { %v738_v6 = vpop.xlane.xlu2 %737 }
 0x2d0   : > { %1286 = vrcp.f32 %v738_v6 }
 0x2d6   : > { %v1287_v7 = vpop.eup %1286 }
 0x2d7   : > { %v740_v8 = vmul.f32 %v1287_v7, %v1283_v63 }
 0x2d9   : > { %v741_v9 = vpack.c.bf16 %v740_v8, %v740_v8 }
 0x2db   : > { %1131 = vst.msk [vmem:[%s1820_s26 + $0x8] sm:$0xf] %vm600_vm6, %v741_v9 }
 0x2e5   : > { %v623_v10 = vpop.f32.mrf.mxu3 }
 0x2e6   : > { %v627_v11 = vpack.c.bf16 %v623_v10, %v623_v10 }
 0x2e8   : > { %628 = vst.msk [vmem:[#allocation3] sm:$0xf] %vm600_vm6, %v627_v11 }
 0x2ed   : > { %v625_v12 = vpop.f32.mrf.mxu3 }
 0x2f5   : > { %v655_v13 = vpop.f32.mrf.mxu3 }
 0x2f6   : > { %v659_v14 = vsel %vm1802_vm5, -1e+30, %v655_v13 }
 0x2f7   : > { %v660_v15 = vsel %vm564_vm2, %v659_v14, -inf }
 0x2f8   : > { %661 = vmax.xlane.f32.xlu1 %v660_v15 }
 0x2fd   : > { %v657_v16 = vpop.f32.mrf.mxu3 }
 0x305   : > { %v795_v17 = vpop.f32.mrf.mxu3 }
 0x306   : > { %v799_v18 = vsel %vm1802_vm5, -1e+30, %v795_v17 }
 0x307   : > { %v800_v19 = vsel %vm564_vm2, %v799_v18, -inf }
 0x308   : > { %801 = vmax.xlane.f32.xlu0 %v800_v19 }
 0x30d   : > { %v797_v20 = vpop.f32.mrf.mxu3 }
 0x311   : > { %674 = vrot.lane.b32.xlu1 %v1793_v28, %s1584_s18 }
 0x36b   : > { %v662_v21 = vpop.xlane.xlu1 %661 }
 0x36c   : > { %v663_v22 = vsub.f32 %v659_v14, %v662_v21 }
 0x36e   : > { %v664_v23 = vmul.f32 1.442695, %v663_v22 }
 0x370   : > { %1288 = vpow2.f32 %v664_v23 }
 0x376   : > { %v1289_v24 = vpop.eup %1288 }
 0x377   : > { %v666_v25 = vsel %vm564_vm2, %v1289_v24, 0.0 }
 0x378   : > { %667 = vadd.xlane.f32.xlu2 %v666_v25 }
 0x37b   : > { %v802_v27 = vpop.xlane.xlu0 %801 }
 0x37c   : > { %v803_v29 = vsub.f32 %v799_v18, %v802_v27 }
 0x37e   : > { %v804_v30 = vmul.f32 1.442695, %v803_v29 }
 0x380   : > { %1290 = vpow2.f32 %v804_v30 }
 0x383   : > { %v675_v31 = vpop.permute.xlu1 %674 }
 0x384   : > { %v680_v32 = vsel %vm610_vm3, %v675_v31, 0 }
 0x385   : > { %689 = vmatpush.bf16.msrb.mxu0 %v680_v32 }
 0x386   : > { %v1291_v33 = vpop.eup %1290 }
 0x387   : > { %v806_v28 = vsel %vm564_vm2, %v1291_v33, 0.0 }
 0x388   : > { %807 = vadd.xlane.f32.xlu0 %v806_v28 }
 0x390   : > { %744 = vrot.lane.b32.xlu2 %v1789_v26, %s1585_s28 }
 0x39c   : > { %814 = vrot.lane.b32.xlu0 %v1813_v57, %s1586_s2 }
 0x3eb   : > { %v668_v34 = vpop.xlane.xlu2 %667 }
 0x3ec   : > { %1292 = vrcp.f32 %v668_v34 }
 0x3f2   : > { %v1293_v35 = vpop.eup %1292 }
 0x3f3   : > { %v670_v36 = vmul.f32 %v1293_v35, %v1289_v24  ;;  %v745_v37 = vpop.permute.xlu2 %744 }
 0x3f4   : > { %v750_v38 = vsel %vm610_vm3, %v745_v37, 0 }
 0x3f5   : > { %759 = vmatpush.bf16.msrb.mxu2 %v750_v38  ;;  %v671_v39 = vpack.c.bf16 %v670_v36, %v670_v36 }
 0x3f7   : > { %1128 = vst.msk [vmem:[%s1820_s26 + $0x4] sm:$0xf] %vm600_vm6, %v671_v39  ;;  %1129 = vmatmul.msk.bf16.vlgmr.msrb.gmra.mxu0 %vm564_vm2, %v671_v39 }
 0x3f8   : > { %1132 = vmatmul.msk.bf16.vlgmr.msrb.gmra.mxu2 %vm564_vm2, %v741_v9 }
 0x3fb   : > { %v808_v26 = vpop.xlane.xlu0 %807 }
 0x3fc   : > { %1294 = vrcp.f32 %v808_v26 }
 0x402   : > { %v1295_v40 = vpop.eup %1294 }
 0x403   : > { %v810_v41 = vmul.f32 %v1295_v40, %v1291_v33 }
 0x405   : > { %v811_v42 = vpack.c.bf16 %v810_v41, %v810_v41 }
 0x407   : > { %1134 = vst.msk [vmem:[%s1820_s26 + $0xc] sm:$0xf] %vm600_vm6, %v811_v42 }
 0x40e   : > { %v815_v43 = vpop.permute.xlu0 %814 }
 0x40f   : > { %v820_v44 = vsel %vm610_vm3, %v815_v43, 0 }
 0x410   : > { %829 = vmatpush.bf16.msra.mxu0 %v820_v44 }
 0x413   : > { %1135 = vmatmul.msk.bf16.vlgmr.msra.gmra.mxu0 %vm564_vm2, %v811_v42 }
 0x474   : > { %v691_v45 = vpop.f32.mrf.mxu0 }
 0x475   : > { %v695_v46 = vpack.c.bf16 %v691_v45, %v691_v45 }
 0x477   : > { %697 = vrot.lane.b32.xlu1 %v695_v46, %s1587_s20 }
 0x47b   : > { %v761_v47 = vpop.f32.mrf.mxu2 }
 0x47c   : > { %v765_v48 = vpack.c.bf16 %v761_v47, %v761_v47  ;;  %v693_v49 = vpop.f32.mrf.mxu0 }
 0x47f   : > { %767 = vrot.lane.b32.xlu1 %v765_v48, %s1588_s4 }
 0x483   : > { %v763_v50 = vpop.f32.mrf.mxu2 }
 0x490   : > { %v831_v51 = vpop.f32.mrf.mxu0 }
 0x491   : > { %v835_v52 = vpack.c.bf16 %v831_v51, %v831_v51 }
 0x493   : > { %837 = vrot.lane.b32.xlu2 %v835_v52, %s1589_s6 }
 0x498   : > { %v833_v53 = vpop.f32.mrf.mxu0 }
 0x4e9   : > { %v698_v56 = vpop.permute.xlu1 %697 }
 0x4ea   : > { %701 = vst.msk [vmem:[#allocation3] sm:$0xf] %vm700_vm7, %v698_v56 }
 0x4ed   : > { %v838_v58 = vpop.permute.xlu2 %837 }
 0x4f1   : > { %v768_v57 = vpop.permute.xlu1 %767 }
 0x4f2   : > { %771 = vst.msk [vmem:[#allocation3] sm:$0xf] %vm770_vm8, %v768_v57 }
 0x4f3   : > { %841 = vst.msk [vmem:[#allocation3] sm:$0xf] %vm840_vm9, %v838_v58 }
 0x4fa   : > { %v842_v59 = vld [vmem:[#allocation3] sm:$0xf] }
 0x4fb   : > { %1144 = vmatmul.msk.bf16.vlgmr.msra.gmra.mxu1 %vm496_vm0, %v842_v59 }
 0x4fc   : > { %1473 = shalt.err (!%p1470_p13)
}
 0x4fd   : > { %s1590_s26 = smov 64   ;;  %s1591_s28 = smov 4  }
 0x4fe   : > { %1176 = dma.vmem_to_hbm [thread:$0]  (%p1729_p4), %s915_s19, 256, %s917_s21, %s886_s15, %s1590_s26, %s1590_s26, %s1591_s28  }
 0x4ff   : > { %s1147_s2 = sshll.u32 %s1564_s12, 3  ;;  %s1105_s20 = sshll.u32 %s1756_s25, 3 }
 0x500   : > { %s1950_s11 = sld [smem:[#allocation31_spill]]  ;;  %s460_s16 = scalar_lea.vmem [#allocation13], %s1105_s20 }
 0x501   : > { %s1952_s29 = sld [smem:[#allocation30_spill]]  ;;  %s899_s17 = sshll.u32 %s460_s16, 4  ;;  %s900_s17 = int_to_ptr.vmem [resolvable:$true] %s899_s17 }
 0x502   : > { %s881_s12 = scalar_lea.sflag [#allocation6], %s1756_s25 }
 0x506   : > { %s1951_s7 = smov %s1950_s11  ;;  %s897_s8 = scalar_lea.hbm %s1950_s11, %s1147_s2 }
 0x507   : > { %v1279_v60 = vld [vmem:[%s1952_s29] ss:$0 sm:$0xff]  ;;  %s901_s23 = sshll.u32 %s897_s8, 4  ;;  %s1494_s18 = scalar_lea.hbm %s1951_s7, 16  ;;  %s902_s23 = int_to_ptr.hbm [resolvable:$true] %s901_s23 }
 0x508   : > { %s1488_s19 = sshra.s32 %s902_s23, 4  ;;  %s1489_s19 = int_to_ptr.hbm [resolvable:$true] %s1488_s19 }
 0x509   : > { %s1490_s21 = scalar_lea.hbm %s1489_s19, 8  ;;  %p1495_p8 = scmp.lt.s32.totalorder %s1489_s19, %s1951_s7 }
 0x50a   : > { %p1491_p0 = scmp.ne.s32.totalorder %s1489_s19, %s1490_s21  ;;  %p1496_p1 = scmp.lt.s32.totalorder %s1494_s18, %s1490_s21 }
 0x50c   : > { %p1492_p2 = pnand %p1491_p0, %p1729_p4  ;;  %p1497_p3 = por %p1496_p1, %p1495_p8 }
 0x50e   : > { %p1493_p5 = pneg %p1492_p2 }
 0x510   : > { %p1498_p9 = pnand %p1497_p3, %p1493_p5 }
 0x578   : > { %v875_v61 = vpop.f32.mrf.mxu1 }
 0x579   : > { %v876_v62 = vadd.f32 %v1279_v60, %v875_v61 }
 0x57b   : > { %879 = vst.msk [vmem:[%s460_s16] sm:$0xff] %vm496_vm0, %v876_v62 }
 0x57c   : > { %1501 = shalt.err (!%p1498_p9)
}
 0x57d   : > { %1175 = dma.vmem_to_hbm [thread:$0]  (%p1729_p4), %s900_s17, 128, %s902_s23, %s881_s12  }
 0x580   : > { %v877_v63 = vpop.f32.mrf.mxu1 }
 0x581 PF: > { %s1953_s25 = sld [smem:[#allocation22_spill]]  ;;  %p1197_p10 = pnand %p1094_p6, %p1737_p7 }
 0x583   : > { %p1198_p11 = pneg %p1197_p10 }
 0x587   : > { %s931_s20 = sand.u32 1, %s1953_s25  }
 0x588   : > { %s932_s4 = scalar_lea.sflag [#allocation6], %s931_s20 }
 0x589   : > { %1543 = dma.done.wait (%p1198_p11), %s932_s4, 128  }
 0x58a   : > { %1545 = vsyncadd (%p1198_p11), %s932_s4, 4294967168  ;;  %s942_s6 = scalar_lea.sflag [#allocation15], %s931_s20 }
 0x58b   : > { %1547 = dma.done.wait (%p1198_p11), %s942_s6, 256  }
 0x58c   : > { %1549 = vsyncadd (%p1198_p11), %s942_s6, 4294967040  ;;  %s33_s14 = sadd.s32 1, %s1572_s14   ;;  %s1955_s27 = sld [smem:[#allocation23_spill]] }
 0x58d   : > { %p30_p12 = scmp.ge.s32.totalorder %s33_s14, 4   ;;  %s1956_s11 = sld [smem:[#allocation25_spill]] }
 0x58e   : > { %s1957_s8 = sld [smem:[#allocation24_spill]]  ;;  %s1958_s30 = smov %s1556_s10 }
 0x58f   : > { %s1960_s12 = smov %s1568_s13 }
 0x590   :  { %32 = sbr.rel (!%p30_p12) target bundleno = 18 (0x12), region = 147 }
 0x592   : > { %s1959_s10 = smov %s1955_s27 }
 0x594   : > { %s1961_s13 = smov %s1957_s8 }
 0x595   :  { %948 = vsyncpa [#allocation5], 1 }
 0x596   :  { %950 = vsyncpa [#allocation5 + $0x1], 1 }
 0x597   :  { %951 = vsyncpa [#allocation8], 1 }
 0x598   :  { %953 = vsyncpa [#allocation8 + $0x1], 1 }
 0x599   :  { %954 = vsyncpa [#allocation11], 1 }
 0x59a   :  { %955 = vsyncpa [#allocation6], 1 }
 0x59b   :  { %957 = vsyncpa [#allocation6 + $0x1], 1 }
 0x59c   :  { %958 = vsyncpa [#allocation15], 1 }
 0x59d   :  { %960 = vsyncpa [#allocation15 + $0x1], 1 }

// kernel: tpu_custom_call.1
= control target key start
LH: loop header
LB: loop body
LE: loop exit
PB: predicated region body
PF: predicated region fallthrough
CT: control target
= control target key end

     0   :  { %s1911_s0 = inlined_call_operand.hbm [shape: bf16[2,8,32], index: 0, kind: input, shape index: {}]   ;;  %s1912_s1 = inlined_call_operand.hbm [shape: s8[2,8,8], index: 1, kind: input, shape index: {}]   ;;  %s1913_s2 = inlined_call_operand.hbm [shape: bf16[32,32], index: 2, kind: input, shape index: {}]   ;;  %s1914_s3 = inlined_call_operand.vmem [shape: f32[1,32], index: 3, kind: input, shape index: {}]   ;;  %s1915_s4 = inlined_call_operand.hbm [shape: bf16[32,64], index: 4, kind: input, shape index: {}]   ;;  %s1916_s5 = inlined_call_operand.vmem [shape: f32[1,64], index: 5, kind: input, shape index: {}]   ;;  %s1917_s6 = inlined_call_operand.hbm [shape: bf16[32,32], index: 6, kind: input, shape index: {}]   ;;  %s1918_s7 = inlined_call_operand.vmem [shape: f32[1,32], index: 7, kind: input, shape index: {}]   ;;  %s1919_s8 = inlined_call_operand.hbm [shape: f32[2,8,32], index: 8, kind: output, shape index: {0}]   ;;  %s1920_s9 = inlined_call_operand.hbm [shape: bf16[2,4,8,8], index: 9, kind: output, shape index: {1}]  }
   0x1   :  { %1927 = sst [smem:[#allocation27_spill]] %s1913_s2 }
   0x2   :  { %1928 = sst [smem:[#allocation28_spill]] %s1915_s4 }
   0x3   :  { %1929 = sst [smem:[#allocation29_spill]] %s1917_s6 }
   0x4   :  { %1930 = sst [smem:[#allocation30_spill]] %s1918_s7 }
   0x5   :  { %1931 = sst [smem:[#allocation31_spill]] %s1919_s8 }
   0x6   :  { %1932 = sst [smem:[#allocation32_spill]] %s1920_s9 }
   0x7   :  { %15 = vsyncpa [#allocation5], 0 }
   0x8   :  { %17 = vsyncpa [#allocation5 + $0x1], 0 }
   0x9   :  { %18 = vsyncpa [#allocation8], 0 }
   0xa   :  { %20 = vsyncpa [#allocation8 + $0x1], 0 }
   0xb   :  { %21 = vsyncpa [#allocation11], 0 }
   0xc   :  { %22 = vsyncpa [#allocation6], 0 }
   0xd   :  { %24 = vsyncpa [#allocation6 + $0x1], 0 }
   0xe   :  { %25 = vsyncpa [#allocation15], 0 }
   0xf   :  { %27 = vsyncpa [#allocation15 + $0x1], 0  ;;  %s1642_s30 = smov 0   ;;  %s1644_s10 = smov 0  }
  0x10   :  { %s1646_s11 = smov 0   ;;  %s1648_s12 = smov 0  }
  0x11   :  { %s1650_s13 = smov 0   ;;  %s1652_s14 = smov 0  }
  0x12 LB: > { %1933 = sst [smem:[#allocation22_spill]] %s1552_s30  ;;  %s1673_s15 = sadd.s32 4294967295, %s1572_s14   ;;  %s1572_s14 = sphi %s1652_s14, %s33_s14   ;;  %s1568_s13 = sphi %s1650_s13, %s1961_s13   ;;  %s1564_s12 = sphi %s1648_s12, %s1960_s12   ;;  %s1560_s11 = sphi %s1646_s11, %s1956_s11   ;;  %s1556_s10 = sphi %s1644_s10, %s1959_s10   ;;  %s1552_s30 = sphi %s1642_s30, %s1958_s30  }
  0x13   : > { %1934 = sst [smem:[#allocation23_spill]] %s1560_s11  ;;  %p1090_p0 = scmp.ge.s32.totalorder %s1572_s14, 1 }
  0x14   : > { %p66_p1 = scmp.eq.s32.totalorder %s1673_s15, 0  ;;  %p286_p2 = scmp.lt.s32.totalorder %s1572_s14, 3 }
  0x15   : > { %s1935_s2 = sld [smem:[#allocation27_spill]]  ;;  %s1574_s20 = smov [#allocation9]  }
  0x16   : > { %p1681_p3 = pnand %p1090_p0, %p286_p2  ;;  %s299_s21 = sshll.u32 %s1574_s20, 4  ;;  %s300_s21 = int_to_ptr.vmem [resolvable:$true] %s299_s21 }
  0x17   : > { %p1094_p6 = scmp.ge.s32.totalorder %s1572_s14, 2  ;;  %s1938_s4 = sld [smem:[#allocation28_spill]] }
  0x18   : > { %p1179_p4 = pneg %p1681_p3  ;;  %s1575_s26 = smov 64  }
  0x19   : > { %s1576_s27 = smov 4   ;;  %s1577_s28 = smov [#allocation10]  }
  0x1a   : > { %p1689_p5 = pnand %p1179_p4, %p66_p1  ;;  %s316_s29 = sshll.u32 %s1577_s28, 4  ;;  %s317_s29 = int_to_ptr.vmem [resolvable:$true] %s316_s29 }
  0x1b   : > { %s297_s18 = sshll.u32 %s1935_s2, 4  ;;  %s1939_s6 = sld [smem:[#allocation29_spill]]  ;;  %s298_s18 = int_to_ptr.hbm [resolvable:$true] %s297_s18 }
  0x1c   : > { %1182 = dma.hbm_to_vmem [thread:$0]  (!%p1689_p5), %s298_s18, 256, %s300_s21, [#allocation8], %s1575_s26, %s1575_s26, %s1576_s27  }
  0x1d   : > { %s314_s25 = sshll.u32 %s1938_s4, 4  ;;  %s1578_s23 = smov [#allocation12]   ;;  %s315_s25 = int_to_ptr.hbm [resolvable:$true] %s314_s25 }
  0x1e   : > { %1185 = dma.hbm_to_vmem [thread:$0]  (!%p1689_p5), %s315_s25, 256, %s317_s29, [#allocation11], %s1575_s26, %s1575_s26, %s1576_s27  }
  0x1f   : > { %s333_s24 = sshll.u32 %s1578_s23, 4  ;;  %s1089_s18 = sadd.s32 4294967294, %s1572_s14   ;;  %s334_s24 = int_to_ptr.vmem [resolvable:$true] %s333_s24 }
  0x20   : > { %s45_s21 = sadd.s32 1, %s1568_s13  ;;  %s52_s28 = sadd.s32 1, %s1560_s11 }
  0x21   : > { %s331_s20 = sshll.u32 %s1939_s6, 4  ;;  %p47_p7 = scmp.ge.s32.totalorder %s45_s21, 2  ;;  %s332_s20 = int_to_ptr.hbm [resolvable:$true] %s331_s20 }
  0x22   : > { %1188 = dma.hbm_to_vmem [thread:$0]  (!%p1689_p5), %s332_s20, 256, %s334_s24, [#allocation11], %s1575_s26, %s1575_s26, %s1576_s27  }
  0x23   : > { %p59_p8 = scmp.ne.s32.totalorder %s1560_s11, %s1556_s10  ;;  %p60_p9 = scmp.eq.s32.totalorder %s1572_s14, 0 }
  0x24   : > { %p65_p10 = scmp.ne.s32.totalorder %s1556_s10, %s1552_s30  ;;  %s1963_s21 = smov (%p47_p7, %s45_s21), 0 }
  0x25   : > { %1940 = sst [smem:[#allocation24_spill]] %s1963_s21  ;;  %p1716_p11 = por %p60_p9, %p59_p8 }
  0x26   : > { %p1722_p12 = por %p66_p1, %p65_p10  ;;  %s49_s26 = ssub.s32 %s1568_s13, %s1963_s21 }
  0x27   : > { %p245_p13 = scmp.eq.s32.totalorder %s1673_s15, 1  ;;  %p50_p0 = scmp.eq.s32.totalorder %s49_s26, 0 }
  0x28   : > { %p251_p2 = scmp.eq.s32.totalorder %s1089_s18, 1  ;;  %p1206_p5 = scmp.lt.s32.totalorder %s1572_s14, 2 }
  0x29   : > { %p1729_p4 = por %p245_p13, %p59_p8  ;;  %s350_s17 = sand.u32 1, %s1560_s11  }
  0x2a   : > { %s1735_s29 = scalar_select %p50_p0, %s1560_s11, %s52_s28  }
  0x2b   : > { %p1737_p7 = por %p251_p2, %p65_p10  ;;  %s1095_s20 = sshll.u32 %s350_s17, 2 }
  0x2c   : > { %1944 = sst [smem:[#allocation25_spill]] %s1735_s29  ;;  %s1096_s23 = sshll.u32 %s1568_s13, 2 }
  0x2d   : > { %s1945_s16 = scalar_select %p1737_p7, 1, 0 }
  0x2e   : > { %s358_s26 = scalar_lea.hbm %s1911_s0, %s1096_s23  ;;  %s354_s18 = scalar_lea.vmem [#allocation4], %s1095_s20 }
  0x2f   : > { %1946 = sst [smem:[#allocation26_spill]] %s1945_s16  ;;  %s362_s4 = sshll.u32 %s354_s18, 4  ;;  %s363_s4 = int_to_ptr.vmem [resolvable:$true] %s362_s4 }
  0x30   : > { %s360_s6 = sshll.u32 %s358_s26, 4  ;;  %p1190_p8 = pnand %p1206_p5, %p1716_p11  ;;  %s361_s6 = int_to_ptr.hbm [resolvable:$true] %s360_s6 }
  0x31   : > { %s369_s28 = sand.u32 1, %s1572_s14   ;;  %s1097_s21 = sshll.u32 %s350_s17, 1 }
  0x32   : > { %s351_s29 = scalar_lea.sflag [#allocation5], %s350_s17  ;;  %s1098_s30 = sshll.u32 %s1568_s13, 1 }
  0x33   : > { %1192 = dma.hbm_to_vmem [thread:$0]  (!%p1190_p8), %s361_s6, 64, %s363_s4, %s351_s29  }
  0x34   : > { %s378_s7 = scalar_lea.hbm %s1912_s1, %s1098_s30  ;;  %s373_s8 = scalar_lea.vmem [#allocation7], %s1097_s21 }
  0x35   : > { %s382_s9 = sshll.u32 %s373_s8, 4  ;;  %s380_s2 = sshll.u32 %s378_s7, 4  ;;  %s383_s9 = int_to_ptr.vmem [resolvable:$true] %s382_s9  ;;  %s381_s2 = int_to_ptr.hbm [resolvable:$true] %s380_s2 }
  0x36   : > { %s370_s20 = scalar_lea.sflag [#allocation8], %s369_s28  ;;  %391 = sbr.rel (%p1681_p3) target bundleno = 1409 (0x581), region = 52 }
  0x37   : > { %1195 = dma.hbm_to_vmem [thread:$0]  (!%p1190_p8), %s381_s2, 32, %s383_s9, %s370_s20  }
  0x38   : > { %s1756_s25 = sand.u32 (!%p1681_p3), 1, %s1556_s10  }
  0x39   : > { %s1100_s4 = sshll.u32 (!%p1681_p3), %s1756_s25, 2  ;;  %s394_s6 = scalar_lea.sflag (!%p1681_p3), [#allocation5], %s1756_s25 }
  0x3a   : > { %s397_s11 = scalar_lea.vmem (!%p1681_p3), [#allocation4], %s1100_s4 }
  0x3b   : > { %1527 = dma.done.wait (%p1722_p12), %s394_s6, 64  }
  0x3c   : > { %1529 = vsyncadd (%p1722_p12), %s394_s6, 4294967232  ;;  %s403_s7 = sand.u32 1, %s1673_s15   ;;  %s1101_s8 = sshll.u32 %s1756_s25, 1 }
  0x3d   : > { %s404_s9 = scalar_lea.sflag [#allocation8], %s403_s7  ;;  %s1766_s30 = scalar_lea.vmem [#allocation7], %s1101_s8 }
  0x3e   : > { %1531 = dma.done.wait (%p1722_p12), %s404_s9, 32  }
  0x3f   : > { %1533 = vsyncadd (%p1722_p12), %s404_s9, 4294967264 }
  0x40   : > { %1535 = dma.done.wait (%p66_p1), [#allocation8], 256  }
  0x41   : > { %1537 = vsyncadd (%p66_p1), [#allocation8], 4294967040 }
  0x42   : > { %1539 = dma.done.wait (%p66_p1), [#allocation11], 512  }
  0x43   : > { %1541 = vsyncadd (%p66_p1), [#allocation11], 4294966784  ;;  %v1153_v0 = vld [vmem:[#allocation10 + $0x8] sm:$0xff]  ;;  %v1155_v1 = vld [vmem:[#allocation9 + $0x8] sm:$0xff]  ;;  %vm496_vm0 = vcmask 261120   ;;  %vm514_vm1 = vcmask 519168  }
  0x44   : > { %v1152_v2 = vld [vmem:[#allocation10] sm:$0xff]  ;;  %506 = vmatpush.bf16.msra.mxu0 %v1153_v0  ;;  %552 = vmatpush.bf16.msra.mxu1 %v1155_v1  ;;  %v1154_v3 = vld [vmem:[#allocation9] sm:$0xff]  ;;  %v1277_v6 = vld [vmem:[%s1916_s5] ss:$0 sm:$0xff]  ;;  %vm564_vm2 = vcmask 64512   ;;  %s1579_s29 = smov 120  }
  0x45   : > { %v475_v4 = vld [vmem:[%s397_s11] sm:$0xf]  ;;  %v1278_v7 = vld [vmem:[%s1914_s3] ss:$0 sm:$0xff]  ;;  %s1580_s16 = smov 96   ;;  %s1581_s17 = smov 112  }
  0x46   : > { %v521_v5 = vld [vmem:[%s397_s11] sm:$0xf]  ;;  %s1582_s23 = smov 104   ;;  %vm610_vm3 = vcmask 1043456   ;;  %v561_v34 = vld [vmem:[%s1766_s30] sm:$0x3] }
  0x47   : > { %vm562_vm4 = vnez %v561_v34  ;;  %v1583_v37 = vmov 0   ;;  %s1106_s24 = sshll.u32 %s1756_s25, 4  ;;  %vm600_vm6 = vcmask 60416   ;;  %s1584_s18 = smov 88   ;;  %vm700_vm7 = vcmask 126016  }
  0x48   : > { %507 = vmatpush.bf16.msra.mxu0 %v1152_v2  ;;  %553 = vmatpush.bf16.msra.mxu1 %v1154_v3  ;;  %v584_v38 = vsel %vm562_vm4, 16843009, %v1583_v37  ;;  %s1820_s26 = scalar_lea.vmem [#allocation14], %s1106_s24  ;;  %s1585_s28 = smov 80   ;;  %vm770_vm8 = vcmask 191616   ;;  %vm840_vm9 = vcmask 257216  }
  0x49   : > { %v585_v39 = vunpack.c.0.s8 %v584_v38  ;;  %s1586_s2 = smov 72   ;;  %s1587_s20 = smov 8  }
  0x4a   : > { %s1588_s4 = smov 16   ;;  %s1589_s6 = smov 24  }
  0x4b   : > { %1115 = vmatmul.msk.bf16.vlgmr.msra.gmra.mxu0 %vm496_vm0, %v475_v4  ;;  %1124 = vmatmul.msk.bf16.vlgmr.msra.gmra.mxu1 %vm496_vm0, %v521_v5  ;;  %vm1802_vm5 = vcmp.ne.s32.totalorder %v585_v39, 0  ;;  %s1158_s11 = sshll.u32 %s1564_s12, 4  ;;  %s1949_s9 = sld [smem:[#allocation32_spill]] }
  0x4c   : > { %s914_s19 = sshll.u32 %s1820_s26, 4  ;;  %s886_s15 = scalar_lea.sflag [#allocation15], %s1756_s25  ;;  %s915_s19 = int_to_ptr.vmem [resolvable:$true] %s914_s19 }
  0x51   : > { %s913_s30 = scalar_lea.hbm %s1949_s9, %s1158_s11 }
  0x52   : > { %s916_s21 = sshll.u32 %s913_s30, 4  ;;  %s917_s21 = int_to_ptr.hbm [resolvable:$true] %s916_s21 }
  0x53   : > { %s1460_s22 = sshra.s32 %s917_s21, 4  ;;  %s1461_s22 = int_to_ptr.hbm [resolvable:$true] %s1460_s22 }
  0x54   : > { %p1467_p10 = scmp.lt.s32.totalorder %s1461_s22, %s1949_s9 }
  0xc8   : > { %v509_v8 = vpop.f32.mrf.mxu0  ;;  %v555_v9 = vpop.f32.mrf.mxu1 }
  0xc9   : > { %v510_v10 = vadd.f32 %v1277_v6, %v509_v8  ;;  %v556_v11 = vadd.f32 %v1278_v7, %v555_v9 }
  0xcb   : > { %v513_v12 = vpack.c.bf16 %v510_v10, %v510_v10  ;;  %v559_v13 = vmul.f32 0.35355338, %v556_v11 }
  0xcd   : > { %515 = vst.msk [vmem:[#allocation2] sm:$0xf] %vm514_vm1, %v513_v12  ;;  %v560_v14 = vpack.c.bf16 %v559_v13, %v559_v13 }
  0xcf   : > { %v631_v15 = vunpack.c.l.b16 %v560_v14 }
  0xd0   : > { %v511_v16 = vpop.f32.mrf.mxu0  ;;  %v557_v17 = vpop.f32.mrf.mxu1 }
  0xd1   : > { %v632_v18 = vpack.c.b16 %v631_v15, %v631_v15 }
  0xd3   : > { %633 = vrot.lane.b32.xlu2 %v632_v18, %s1579_s29 }
  0xd4   : > { %v563_v19 = vld [vmem:[#allocation2] sm:$0xf] }
  0xd5   : > { %v702_v20 = vld [vmem:[#allocation2] sm:$0xf]  ;;  %v569_v21 = vsel %vm564_vm2, %v563_v19, 0  ;;  %v603_v22 = vunpack.c.l.b16 %v563_v19 }
  0xd6   : > { %v706_v23 = vunpack.c.l.b16 %v702_v20  ;;  %578 = vmatpush.bf16.xpose.msra.mxu2 %v569_v21  ;;  %v629_v25 = vld [vmem:[#allocation2] sm:$0xf] }
  0xd7   : > { %v604_v24 = vpack.c.b16 %v603_v22, %v603_v22  ;;  %v636_v27 = vunpack.c.l.b16 %v629_v25  ;;  %v772_v55 = vld [vmem:[#allocation2] sm:$0xf] }
  0xd8   : > { %v1789_v26 = vpack.c.b16 %v706_v23, %v706_v23  ;;  %v776_v56 = vunpack.c.l.b16 %v772_v55  ;;  %v1156_v55 = vld [vmem:[#allocation12] sm:$0xff] }
  0xd9   : > { %605 = vrot.lane.b32.xlu1 %v604_v24, %s1580_s16  ;;  %v1793_v28 = vpack.c.b16 %v636_v27, %v636_v27 }
  0xda   : > { %v1813_v57 = vpack.c.b16 %v776_v56, %v776_v56 }
  0xdb   : > { %708 = vrot.lane.b32.xlu2 %v1789_v26, %s1581_s17 }
  0xdd   : > { %1125 = vmatmul.msk.bf16.vlgmr.msra.gmra.mxu2 %vm564_vm2, %v560_v14 }
  0xe1   : > { %638 = vrot.lane.b32.xlu1 %v1793_v28, %s1579_s29  ;;  %s1462_s29 = scalar_lea.hbm %s1461_s22, 16 }
  0xe2   : > { %p1463_p1 = scmp.ne.s32.totalorder %s1461_s22, %s1462_s29 }
  0xe3   : > { %773 = vrot.lane.b32.xlu2 %v632_v18, %s1582_s23 }
  0xe4   : > { %p1464_p3 = pnand %p1463_p1, %p1729_p4 }
  0xe6   : > { %p1465_p9 = pneg %p1464_p3 }
  0xe9   : > { %703 = vrot.lane.b32.xlu1 %v632_v18, %s1581_s17 }
 0x12d   : > { %v634_v29 = vpop.permute.xlu2 %633 }
 0x135   : > { %v709_v30 = vpop.permute.xlu2 %708 }
 0x136   : > { %v714_v31 = vsel %vm564_vm2, %v709_v30, 0 }
 0x137   : > { %723 = vmatpush.bf16.xpose.msrb.mxu1 %v714_v31 }
 0x13d   : > { %v774_v58 = vpop.permute.xlu2 %773 }
 0x14b   : > { %v606_v32 = vpop.permute.xlu1 %605 }
 0x14c   : > { %v612_v33 = vsel %vm610_vm3, %v606_v32, 0 }
 0x14d   : > { %621 = vmatpush.bf16.msra.mxu3 %v612_v33 }
 0x153   : > { %v639_v35 = vpop.permute.xlu1 %638 }
 0x154   : > { %v644_v36 = vsel %vm564_vm2, %v639_v35, 0 }
 0x155   : > { %653 = vmatpush.bf16.xpose.msrb.mxu3 %v644_v36 }
 0x15b   : > { %v704_v40 = vpop.permute.xlu1 %703 }
 0x15c   : > { %1130 = vmatmul.msk.bf16.vlgmr.msrb.gmra.mxu1 %vm564_vm2, %v704_v40 }
 0x160   : > { %v580_v42 = vpop.f32.mrf.mxu2 }
 0x161   : > { %v587_v43 = vsel %vm1802_vm5, -1e+30, %v580_v42 }
 0x162   : > { %v588_v44 = vsel %vm564_vm2, %v587_v43, -inf }
 0x163   : > { %589 = vmax.xlane.f32.xlu0 %v588_v44 }
 0x168   : > { %v582_v45 = vpop.f32.mrf.mxu2 }
 0x1d6   : > { %v590_v46 = vpop.xlane.xlu0 %589 }
 0x1d7   : > { %v591_v47 = vsub.f32 %v587_v43, %v590_v46 }
 0x1d9   : > { %v592_v48 = vmul.f32 1.442695, %v591_v47  ;;  %v725_v49 = vpop.f32.mrf.mxu1 }
 0x1da   : > { %v729_v50 = vsel %vm1802_vm5, -1e+30, %v725_v49 }
 0x1db   : > { %1280 = vpow2.f32 %v592_v48  ;;  %v730_v51 = vsel %vm564_vm2, %v729_v50, -inf }
 0x1dc   : > { %731 = vmax.xlane.f32.xlu2 %v730_v51 }
 0x1e1   : > { %v1281_v52 = vpop.eup %1280  ;;  %v727_v53 = vpop.f32.mrf.mxu1 }
 0x1e2   : > { %v594_v54 = vsel %vm564_vm2, %v1281_v52, 0.0 }
 0x1e3   : > { %595 = vadd.xlane.f32.xlu0 %v594_v54  ;;  %v1157_v54 = vld [vmem:[#allocation12 + $0x8] sm:$0xff] }
 0x1e4   : > { %872 = vmatpush.bf16.msra.mxu1 %v1157_v54 }
 0x1e8   : > { %873 = vmatpush.bf16.msra.mxu1 %v1156_v55 }
 0x1f7   : > { %778 = vrot.lane.b32.xlu0 %v1813_v57, %s1582_s23  ;;  %s1466_s23 = scalar_lea.hbm %s1949_s9, 32 }
 0x1f8   : > { %p1468_p11 = scmp.lt.s32.totalorder %s1466_s23, %s1462_s29 }
 0x1fa   : > { %p1469_p12 = por %p1468_p11, %p1467_p10 }
 0x1fc   : > { %p1470_p13 = pnand %p1469_p12, %p1465_p9 }
 0x24f   : > { %v732_v59 = vpop.xlane.xlu2 %731 }
 0x250   : > { %v733_v60 = vsub.f32 %v729_v50, %v732_v59 }
 0x252   : > { %v734_v61 = vmul.f32 1.442695, %v733_v60 }
 0x254   : > { %1282 = vpow2.f32 %v734_v61 }
 0x256   : > { %v596_v62 = vpop.xlane.xlu0 %595 }
 0x257   : > { %1284 = vrcp.f32 %v596_v62 }
 0x25a   : > { %v1283_v63 = vpop.eup %1282 }
 0x25b   : > { %v736_v0 = vsel %vm564_vm2, %v1283_v63, 0.0 }
 0x25c   : > { %737 = vadd.xlane.f32.xlu2 %v736_v0 }
 0x25d   : > { %v1285_v1 = vpop.eup %1284 }
 0x25e   : > { %v598_v2 = vmul.f32 %v1285_v1, %v1281_v52 }
 0x260   : > { %v599_v3 = vpack.c.bf16 %v598_v2, %v598_v2 }
 0x262   : > { %1126 = vmatmul.msk.bf16.vlgmr.msra.gmra.mxu3 %vm564_vm2, %v599_v3  ;;  %601 = vst.msk [vmem:[%s1820_s26] sm:$0xf] %vm600_vm6, %v599_v3 }
 0x269   : > { %v779_v4 = vpop.permute.xlu0 %778 }
 0x26a   : > { %v784_v5 = vsel %vm564_vm2, %v779_v4, 0 }
 0x26b   : > { %793 = vmatpush.bf16.xpose.msra.mxu3 %v784_v5 }
 0x272   : > { %1127 = vmatmul.msk.bf16.vlgmr.msrb.gmra.mxu3 %vm564_vm2, %v634_v29 }
 0x282   : > { %1133 = vmatmul.msk.bf16.vlgmr.msra.gmra.mxu3 %vm564_vm2, %v774_v58 }
 0x2cf   : > { %v738_v6 = vpop.xlane.xlu2 %737 }
 0x2d0   : > { %1286 = vrcp.f32 %v738_v6 }
 0x2d6   : > { %v1287_v7 = vpop.eup %1286 }
 0x2d7   : > { %v740_v8 = vmul.f32 %v1287_v7, %v1283_v63 }
 0x2d9   : > { %v741_v9 = vpack.c.bf16 %v740_v8, %v740_v8 }
 0x2db   : > { %1131 = vst.msk [vmem:[%s1820_s26 + $0x8] sm:$0xf] %vm600_vm6, %v741_v9 }
 0x2e5   : > { %v623_v10 = vpop.f32.mrf.mxu3 }
 0x2e6   : > { %v627_v11 = vpack.c.bf16 %v623_v10, %v623_v10 }
 0x2e8   : > { %628 = vst.msk [vmem:[#allocation3] sm:$0xf] %vm600_vm6, %v627_v11 }
 0x2ed   : > { %v625_v12 = vpop.f32.mrf.mxu3 }
 0x2f5   : > { %v655_v13 = vpop.f32.mrf.mxu3 }
 0x2f6   : > { %v659_v14 = vsel %vm1802_vm5, -1e+30, %v655_v13 }
 0x2f7   : > { %v660_v15 = vsel %vm564_vm2, %v659_v14, -inf }
 0x2f8   : > { %661 = vmax.xlane.f32.xlu1 %v660_v15 }
 0x2fd   : > { %v657_v16 = vpop.f32.mrf.mxu3 }
 0x305   : > { %v795_v17 = vpop.f32.mrf.mxu3 }
 0x306   : > { %v799_v18 = vsel %vm1802_vm5, -1e+30, %v795_v17 }
 0x307   : > { %v800_v19 = vsel %vm564_vm2, %v799_v18, -inf }
 0x308   : > { %801 = vmax.xlane.f32.xlu0 %v800_v19 }
 0x30d   : > { %v797_v20 = vpop.f32.mrf.mxu3 }
 0x311   : > { %674 = vrot.lane.b32.xlu1 %v1793_v28, %s1584_s18 }
 0x36b   : > { %v662_v21 = vpop.xlane.xlu1 %661 }
 0x36c   : > { %v663_v22 = vsub.f32 %v659_v14, %v662_v21 }
 0x36e   : > { %v664_v23 = vmul.f32 1.442695, %v663_v22 }
 0x370   : > { %1288 = vpow2.f32 %v664_v23 }
 0x376   : > { %v1289_v24 = vpop.eup %1288 }
 0x377   : > { %v666_v25 = vsel %vm564_vm2, %v1289_v24, 0.0 }
 0x378   : > { %667 = vadd.xlane.f32.xlu2 %v666_v25 }
 0x37b   : > { %v802_v27 = vpop.xlane.xlu0 %801 }
 0x37c   : > { %v803_v29 = vsub.f32 %v799_v18, %v802_v27 }
 0x37e   : > { %v804_v30 = vmul.f32 1.442695, %v803_v29 }
 0x380   : > { %1290 = vpow2.f32 %v804_v30 }
 0x383   : > { %v675_v31 = vpop.permute.xlu1 %674 }
 0x384   : > { %v680_v32 = vsel %vm610_vm3, %v675_v31, 0 }
 0x385   : > { %689 = vmatpush.bf16.msrb.mxu0 %v680_v32 }
 0x386   : > { %v1291_v33 = vpop.eup %1290 }
 0x387   : > { %v806_v28 = vsel %vm564_vm2, %v1291_v33, 0.0 }
 0x388   : > { %807 = vadd.xlane.f32.xlu0 %v806_v28 }
 0x390   : > { %744 = vrot.lane.b32.xlu2 %v1789_v26, %s1585_s28 }
 0x39c   : > { %814 = vrot.lane.b32.xlu0 %v1813_v57, %s1586_s2 }
 0x3eb   : > { %v668_v34 = vpop.xlane.xlu2 %667 }
 0x3ec   : > { %1292 = vrcp.f32 %v668_v34 }
 0x3f2   : > { %v1293_v35 = vpop.eup %1292 }
 0x3f3   : > { %v670_v36 = vmul.f32 %v1293_v35, %v1289_v24  ;;  %v745_v37 = vpop.permute.xlu2 %744 }
 0x3f4   : > { %v750_v38 = vsel %vm610_vm3, %v745_v37, 0 }
 0x3f5   : > { %759 = vmatpush.bf16.msrb.mxu2 %v750_v38  ;;  %v671_v39 = vpack.c.bf16 %v670_v36, %v670_v36 }
 0x3f7   : > { %1128 = vst.msk [vmem:[%s1820_s26 + $0x4] sm:$0xf] %vm600_vm6, %v671_v39  ;;  %1129 = vmatmul.msk.bf16.vlgmr.msrb.gmra.mxu0 %vm564_vm2, %v671_v39 }
 0x3f8   : > { %1132 = vmatmul.msk.bf16.vlgmr.msrb.gmra.mxu2 %vm564_vm2, %v741_v9 }
 0x3fb   : > { %v808_v26 = vpop.xlane.xlu0 %807 }
 0x3fc   : > { %1294 = vrcp.f32 %v808_v26 }
 0x402   : > { %v1295_v40 = vpop.eup %1294 }
 0x403   : > { %v810_v41 = vmul.f32 %v1295_v40, %v1291_v33 }
 0x405   : > { %v811_v42 = vpack.c.bf16 %v810_v41, %v810_v41 }
 0x407   : > { %1134 = vst.msk [vmem:[%s1820_s26 + $0xc] sm:$0xf] %vm600_vm6, %v811_v42 }
 0x40e   : > { %v815_v43 = vpop.permute.xlu0 %814 }
 0x40f   : > { %v820_v44 = vsel %vm610_vm3, %v815_v43, 0 }
 0x410   : > { %829 = vmatpush.bf16.msra.mxu0 %v820_v44 }
 0x413   : > { %1135 = vmatmul.msk.bf16.vlgmr.msra.gmra.mxu0 %vm564_vm2, %v811_v42 }
 0x474   : > { %v691_v45 = vpop.f32.mrf.mxu0 }
 0x475   : > { %v695_v46 = vpack.c.bf16 %v691_v45, %v691_v45 }
 0x477   : > { %697 = vrot.lane.b32.xlu1 %v695_v46, %s1587_s20 }
 0x47b   : > { %v761_v47 = vpop.f32.mrf.mxu2 }
 0x47c   : > { %v765_v48 = vpack.c.bf16 %v761_v47, %v761_v47  ;;  %v693_v49 = vpop.f32.mrf.mxu0 }
 0x47f   : > { %767 = vrot.lane.b32.xlu1 %v765_v48, %s1588_s4 }
 0x483   : > { %v763_v50 = vpop.f32.mrf.mxu2 }
 0x490   : > { %v831_v51 = vpop.f32.mrf.mxu0 }
 0x491   : > { %v835_v52 = vpack.c.bf16 %v831_v51, %v831_v51 }
 0x493   : > { %837 = vrot.lane.b32.xlu2 %v835_v52, %s1589_s6 }
 0x498   : > { %v833_v53 = vpop.f32.mrf.mxu0 }
 0x4e9   : > { %v698_v56 = vpop.permute.xlu1 %697 }
 0x4ea   : > { %701 = vst.msk [vmem:[#allocation3] sm:$0xf] %vm700_vm7, %v698_v56 }
 0x4ed   : > { %v838_v58 = vpop.permute.xlu2 %837 }
 0x4f1   : > { %v768_v57 = vpop.permute.xlu1 %767 }
 0x4f2   : > { %771 = vst.msk [vmem:[#allocation3] sm:$0xf] %vm770_vm8, %v768_v57 }
 0x4f3   : > { %841 = vst.msk [vmem:[#allocation3] sm:$0xf] %vm840_vm9, %v838_v58 }
 0x4fa   : > { %v842_v59 = vld [vmem:[#allocation3] sm:$0xf] }
 0x4fb   : > { %1144 = vmatmul.msk.bf16.vlgmr.msra.gmra.mxu1 %vm496_vm0, %v842_v59 }
 0x4fc   : > { %1473 = shalt.err (!%p1470_p13)
}
 0x4fd   : > { %s1590_s26 = smov 64   ;;  %s1591_s28 = smov 4  }
 0x4fe   : > { %1176 = dma.vmem_to_hbm [thread:$0]  (%p1729_p4), %s915_s19, 256, %s917_s21, %s886_s15, %s1590_s26, %s1590_s26, %s1591_s28  }
 0x4ff   : > { %s1147_s2 = sshll.u32 %s1564_s12, 3  ;;  %s1105_s20 = sshll.u32 %s1756_s25, 3 }
 0x500   : > { %s1950_s11 = sld [smem:[#allocation31_spill]]  ;;  %s460_s16 = scalar_lea.vmem [#allocation13], %s1105_s20 }
 0x501   : > { %s1952_s29 = sld [smem:[#allocation30_spill]]  ;;  %s899_s17 = sshll.u32 %s460_s16, 4  ;;  %s900_s17 = int_to_ptr.vmem [resolvable:$true] %s899_s17 }
 0x502   : > { %s881_s12 = scalar_lea.sflag [#allocation6], %s1756_s25 }
 0x506   : > { %s1951_s7 = smov %s1950_s11  ;;  %s897_s8 = scalar_lea.hbm %s1950_s11, %s1147_s2 }
 0x507   : > { %v1279_v60 = vld [vmem:[%s1952_s29] ss:$0 sm:$0xff]  ;;  %s901_s23 = sshll.u32 %s897_s8, 4  ;;  %s1494_s18 = scalar_lea.hbm %s1951_s7, 16  ;;  %s902_s23 = int_to_ptr.hbm [resolvable:$true] %s901_s23 }
 0x508   : > { %s1488_s19 = sshra.s32 %s902_s23, 4  ;;  %s1489_s19 = int_to_ptr.hbm [resolvable:$true] %s1488_s19 }
 0x509   : > { %s1490_s21 = scalar_lea.hbm %s1489_s19, 8  ;;  %p1495_p8 = scmp.lt.s32.totalorder %s1489_s19, %s1951_s7 }
 0x50a   : > { %p1491_p0 = scmp.ne.s32.totalorder %s1489_s19, %s1490_s21  ;;  %p1496_p1 = scmp.lt.s32.totalorder %s1494_s18, %s1490_s21 }
 0x50c   : > { %p1492_p2 = pnand %p1491_p0, %p1729_p4  ;;  %p1497_p3 = por %p1496_p1, %p1495_p8 }
 0x50e   : > { %p1493_p5 = pneg %p1492_p2 }
 0x510   : > { %p1498_p9 = pnand %p1497_p3, %p1493_p5 }
 0x578   : > { %v875_v61 = vpop.f32.mrf.mxu1 }
 0x579   : > { %v876_v62 = vadd.f32 %v1279_v60, %v875_v61 }
 0x57b   : > { %879 = vst.msk [vmem:[%s460_s16] sm:$0xff] %vm496_vm0, %v876_v62 }
 0x57c   : > { %1501 = shalt.err (!%p1498_p9)
}
 0x57d   : > { %1175 = dma.vmem_to_hbm [thread:$0]  (%p1729_p4), %s900_s17, 128, %s902_s23, %s881_s12  }
 0x580   : > { %v877_v63 = vpop.f32.mrf.mxu1 }
 0x581 PF: > { %s1953_s25 = sld [smem:[#allocation22_spill]]  ;;  %p1197_p10 = pnand %p1094_p6, %p1737_p7 }
 0x583   : > { %p1198_p11 = pneg %p1197_p10 }
 0x587   : > { %s931_s20 = sand.u32 1, %s1953_s25  }
 0x588   : > { %s932_s4 = scalar_lea.sflag [#allocation6], %s931_s20 }
 0x589   : > { %1543 = dma.done.wait (%p1198_p11), %s932_s4, 128  }
 0x58a   : > { %1545 = vsyncadd (%p1198_p11), %s932_s4, 4294967168  ;;  %s942_s6 = scalar_lea.sflag [#allocation15], %s931_s20 }
 0x58b   : > { %1547 = dma.done.wait (%p1198_p11), %s942_s6, 256  }
 0x58c   : > { %1549 = vsyncadd (%p1198_p11), %s942_s6, 4294967040  ;;  %s33_s14 = sadd.s32 1, %s1572_s14   ;;  %s1955_s27 = sld [smem:[#allocation23_spill]] }
 0x58d   : > { %p30_p12 = scmp.ge.s32.totalorder %s33_s14, 4   ;;  %s1956_s11 = sld [smem:[#allocation25_spill]] }
 0x58e   : > { %s1957_s8 = sld [smem:[#allocation24_spill]]  ;;  %s1958_s30 = smov %s1556_s10 }
 0x58f   : > { %s1960_s12 = smov %s1568_s13 }
 0x590   :  { %32 = sbr.rel (!%p30_p12) target bundleno = 18 (0x12), region = 147 }
 0x592   : > { %s1959_s10 = smov %s1955_s27 }
 0x594   : > { %s1961_s13 = smov %s1957_s8 }
 0x595   :  { %948 = vsyncpa [#allocation5], 1 }
 0x596   :  { %950 = vsyncpa [#allocation5 + $0x1], 1 }
 0x597   :  { %951 = vsyncpa [#allocation8], 1 }
 0x598   :  { %953 = vsyncpa [#allocation8 + $0x1], 1 }
 0x599   :  { %954 = vsyncpa [#allocation11], 1 }
 0x59a   :  { %955 = vsyncpa [#allocation6], 1 }
 0x59b   :  { %957 = vsyncpa [#allocation6 + $0x1], 1 }
 0x59c   :  { %958 = vsyncpa [#allocation15], 1 }
 0x59d   :  { %960 = vsyncpa [#allocation15 + $0x1], 1 }

</bundles_post_ra>
